<compile_context>
chip_gen: v7x
topology: tpu7x:2x2x1
jax: 0.10.0
libtpu: 0.0.40
codegen_flags: <defaults>
</compile_context>

<pallas_src>
import functools

import jax
import jax.numpy as jnp
from jax import lax
from jax.experimental import pallas as pl
from jax.experimental.pallas import tpu as pltpu

HIDDEN = 128  # module-level constant `hidden_size = 128` in the PyTorch file


def _decoder_kernel(h0_ref, tgtb_ref, wcat_ref, brnn_ref, wout_ref, bout_ref,
                    wt2d_ref, bt2d_ref, loss_ref, tours_ref, *, T, S, B):
    Bp, H = h0_ref.shape              # padded batch (multiple of 8), hidden (=128)
    Sp = tours_ref.shape[1]           # lane-padded sequence_length (=128)
    neg_inf = jnp.float32(-jnp.inf)

    # ---- hoisted, step-invariant constants / broadcasts ----------------------
    col_i = lax.broadcasted_iota(jnp.int32, (Bp, Sp), 1)
    col_f = col_i.astype(jnp.float32)
    row_i = lax.broadcasted_iota(jnp.int32, (Bp, 1), 0)
    valid_lane = col_i < S                                   # real classes only
    valid_row = (row_i < B).astype(jnp.float32)              # real batch rows only
    first_logits = jnp.where(col_i == 0, jnp.float32(1.0), neg_inf)
    b_rnn = jnp.broadcast_to(brnn_ref[...], (Bp, H))
    b_out = jnp.broadcast_to(bout_ref[...], (Bp, Sp))        # pad lanes are -inf
    w_t2d = jnp.broadcast_to(wt2d_ref[...], (Bp, H))
    b_t2d = jnp.broadcast_to(bt2d_ref[...], (Bp, H))
    w_cat = wcat_ref[...]                                    # (2H, H)  fused RNN weights
    w_out = wout_ref[...]                                    # (H, Sp)  padded projection

    # ---- recurrent state in vregs --------------------------------------------
    h = h0_ref[...]                                          # context = encoder_context
    x = jnp.ones((Bp, H), jnp.float32)                       # decoder_input = ones(B,1,H)
    mask = jnp.zeros((Bp, Sp), jnp.float32)                  # mask = zeros(B,T).byte()
    chosen = jnp.zeros((Bp, Sp), jnp.float32)                # last chosen index (one-hot)
    tours = jnp.zeros((Bp, Sp), jnp.float32)
    ce_rows = jnp.zeros((Bp, 1), jnp.float32)                # per-row CE accumulator

    for t in range(T):                                       # trace-time unrolled
        # -- nn.RNN (tanh) step, fused: h = tanh([x|h] @ [Wih^T;Whh^T] + (b_ih+b_hh))
        xh = jnp.concatenate([x, h], axis=1)                 # (Bp, 2H)
        h = jnp.tanh(jnp.dot(xh, w_cat, preferred_element_type=jnp.float32) + b_rnn)

        # -- output projection + apply_mask_to_logits
        if t == 0:
            # chosen_indexes is None: logits[:, :] = -inf ; logits[:, :, 0] = 1
            masked = first_logits
        else:
            logits = jnp.dot(h, w_out, preferred_element_type=jnp.float32) + b_out
            mask = jnp.maximum(mask, chosen)                 # clone_mask[b, prev] = 1
            masked = jnp.where(mask > 0, neg_inf, logits)

        # -- softmax over classes (pad / masked lanes -> 0)
        m = jnp.max(masked, axis=-1, keepdims=True)
        e = jnp.exp(masked - m)
        probs = e * pl.reciprocal(jnp.sum(e, axis=-1, keepdims=True), approx=True)
        # TODO(synk): the torch `isAllNan -> break` path is omitted; with
        # time_steps == sequence_length at most T-1 entries are ever masked,
        # so it can never trigger.

        # -- argmax (first maximal index, matching torch/jnp)
        pmax = jnp.max(probs, axis=-1, keepdims=True)
        idx_i = jnp.min(jnp.where(probs == pmax, col_i, Sp), axis=-1, keepdims=True)
        idx_f = idx_i.astype(jnp.float32)
        chosen = (col_i == idx_i).astype(jnp.float32)
        tours = jnp.where(col_i == t, idx_f, tours)          # tours[:, t] = chosen index

        # -- CrossEntropyLoss applied to the *softmax output* (PyTorch quirk)
        tv = tgtb_ref[t]                                     # (Bp, Sp/H) broadcast target
        lse = jnp.log(jnp.sum(jnp.where(valid_lane, jnp.exp(probs), 0.0),
                              axis=-1, keepdims=True))
        picked = jnp.sum(jnp.where(col_f == tv, probs, 0.0), axis=-1, keepdims=True)
        ce_rows = ce_rows + (lse - picked)

        # -- targetToDecoderInput: Linear(1, H) on the scalar target value
        x = tv * w_t2d + b_t2d                               # (requires Sp == H == 128)

    # ---- epilogue: single lane-dense stores -----------------------------------
    # sum_t mean_b CE  ==  (sum over valid rows of ce_rows) / B
    loss_ref[...] = jnp.sum(ce_rows * valid_row, axis=0, keepdims=True) * jnp.float32(1.0 / B)
    tours_ref[...] = tours


def decoder_forward(encoder_context, targets, params):
    """encoder_context: [1, B, H] f32; targets: [B, T] int. Returns (loss, tours[B,1,T])."""
    h0 = encoder_context[0].astype(jnp.float32)              # (B, H)
    B, T = targets.shape
    H = HIDDEN
    S = params["w_out"].shape[0]
    assert S == T, "masking requires time_steps == sequence_length"
    assert H == 128 and S <= 128, "kernel assumes hidden=128 and sequence_length <= 128"

    Bp = max(8, ((B + 7) // 8) * 8)                          # sublane-pad batch
    Sp = 128                                                 # lane-pad classes (== H)

    # ---- padded / fused parameter prep (host side, layout-only) ---------------
    h0_p = jnp.zeros((Bp, H), jnp.float32).at[:B].set(h0)
    tgt_p = jnp.zeros((Bp, T), jnp.float32).at[:B].set(targets.astype(jnp.float32))
    tgt_bcast = jnp.broadcast_to(tgt_p.T[:, :, None], (T, Bp, Sp))   # [t, b, :] = target

    w_cat = jnp.concatenate([params["w_ih"].T, params["w_hh"].T], axis=0).astype(jnp.float32)
    b_rnn = (params["b_ih"] + params["b_hh"]).reshape(1, H).astype(jnp.float32)

    w_out_p = jnp.zeros((H, Sp), jnp.float32).at[:, :S].set(params["w_out"].T.astype(jnp.float32))
    b_out_p = jnp.full((1, Sp), -jnp.inf, jnp.float32).at[:, :S].set(
        params["b_out"].reshape(1, S).astype(jnp.float32))

    w_t2d = params["w_t2d"].T.reshape(1, H).astype(jnp.float32)
    b_t2d = params["b_t2d"].reshape(1, H).astype(jnp.float32)

    vmem = pl.BlockSpec(memory_space=pltpu.MemorySpace.VMEM)
    kernel = functools.partial(_decoder_kernel, T=T, S=S, B=B)

    # TODO(synk): for large batches (>=16) on v7x, add a leading batch grid axis
    # marked "parallel" so both TensorCores run the sequential decode on half
    # the batch; at this size a single invocation is optimal.
    loss, tours_p = pl.pallas_call(
        kernel,
        out_shape=(jax.ShapeDtypeStruct((1, 1), jnp.float32),
                   jax.ShapeDtypeStruct((Bp, Sp), jnp.float32)),
        in_specs=[vmem] * 8,
        out_specs=(vmem, vmem),
    )(h0_p, tgt_bcast, w_cat, b_rnn, w_out_p, b_out_p, w_t2d, b_t2d)

    loss = loss[0, 0] / B                 # `loss /= batch_size` on top of CE mean reduction
    tours = tours_p[:B, :T][:, None, :]   # [B, 1, T], matching torch.cat(tours, 2)
    return loss, tours


def _init_params(key, seq_len):
    H = HIDDEN
    ks = jax.random.split(key, 8)
    k_rnn = 1.0 / jnp.sqrt(H)
    k_lin = 1.0 / jnp.sqrt(H)
    k_t2d = 1.0  # Linear(1, H): 1/sqrt(in_features=1)
    u = lambda k, shp, a: jax.random.uniform(k, shp, jnp.float32, -a, a)
    return {
        "w_ih": u(ks[0], (H, H), k_rnn),
        "w_hh": u(ks[1], (H, H), k_rnn),
        "b_ih": u(ks[2], (H,), k_rnn),
        "b_hh": u(ks[3], (H,), k_rnn),
        "w_out": u(ks[4], (seq_len, H), k_lin),
        "b_out": u(ks[5], (seq_len,), k_lin),
        "w_t2d": u(ks[6], (H, 1), k_t2d),
        "b_t2d": u(ks[7], (H,), k_t2d),
    }


if __name__ == "__main__":
    B, T = 4, 8                        # batch, time_steps (== sequence_length)
    key = jax.random.PRNGKey(0)
    k_p, k_h, k_t = jax.random.split(key, 3)

    params = _init_params(k_p, T)
    encoder_context = jax.random.normal(k_h, (1, B, HIDDEN), jnp.float32)
    targets = jax.random.randint(k_t, (B, T), 0, T, jnp.int32)

    loss, tours = decoder_forward(encoder_context, targets, params)
    jax.block_until_ready((loss, tours))
    assert tours.shape == (B, 1, T)
    assert bool(jnp.isfinite(loss))
    print("KERNEL_OK")
</pallas_src>

<mosaic_0001>
module attributes {stable_mosaic.version = 11 : i64} {
  func.func @_decoder_kernel(%arg0: memref<8x128xf32, #tpu.memory_space<vmem>>, %arg1: memref<8x8x128xf32, #tpu.memory_space<vmem>>, %arg2: memref<256x128xf32, #tpu.memory_space<vmem>>, %arg3: memref<1x128xf32, #tpu.memory_space<vmem>>, %arg4: memref<128x128xf32, #tpu.memory_space<vmem>>, %arg5: memref<1x128xf32, #tpu.memory_space<vmem>>, %arg6: memref<1x128xf32, #tpu.memory_space<vmem>>, %arg7: memref<1x128xf32, #tpu.memory_space<vmem>>, %arg8: memref<1x1xf32, #tpu.memory_space<vmem>>, %arg9: memref<8x128xf32, #tpu.memory_space<vmem>>) attributes {dimension_semantics = [], scalar_prefetch = 0 : i64, scratch_operands = 0 : i64, tpu.core_type = #tpu.core_type<tc>} {
    %0 = tpu.iota {dimensions = array<i32: 1>} : vector<8x128xi32>
    %1 = arith.sitofp %0 : vector<8x128xi32> to vector<8x128xf32>
    %2 = tpu.iota {dimensions = array<i32: 0>} : vector<8x1xi32>
    %c8_i32 = arith.constant 8 : i32
    %3 = vector.broadcast %c8_i32 : i32 to vector<8x128xi32>
    %4 = arith.cmpi slt, %0, %3 : vector<8x128xi32>
    %c4_i32 = arith.constant 4 : i32
    %5 = vector.broadcast %c4_i32 : i32 to vector<8x1xi32>
    %6 = arith.cmpi slt, %2, %5 : vector<8x1xi32>
    %7 = arith.extui %6 : vector<8x1xi1> to vector<8x1xi32>
    %8 = arith.sitofp %7 : vector<8x1xi32> to vector<8x1xf32>
    %c0_i32 = arith.constant 0 : i32
    %9 = vector.broadcast %c0_i32 : i32 to vector<8x128xi32>
    %10 = arith.cmpi eq, %0, %9 : vector<8x128xi32>
    %cst = arith.constant 1.000000e+00 : f32
    %cst_0 = arith.constant 0xFF800000 : f32
    %11 = vector.broadcast %cst : f32 to vector<8x128xf32>
    %12 = vector.broadcast %cst_0 : f32 to vector<8x128xf32>
    %13 = arith.select %10, %11, %12 : vector<8x128xi1>, vector<8x128xf32>
    %c0 = arith.constant 0 : index
    %c0_1 = arith.constant 0 : index
    %14 = vector.load %arg3[%c0, %c0_1] : memref<1x128xf32, #tpu.memory_space<vmem>>, vector<1x128xf32>
    %15 = vector.shape_cast %14 : vector<1x128xf32> to vector<1x128xf32>
    %16 = vector.broadcast %15 : vector<1x128xf32> to vector<8x128xf32>
    %c0_2 = arith.constant 0 : index
    %c0_3 = arith.constant 0 : index
    %17 = vector.load %arg5[%c0_2, %c0_3] : memref<1x128xf32, #tpu.memory_space<vmem>>, vector<1x128xf32>
    %18 = vector.shape_cast %17 : vector<1x128xf32> to vector<1x128xf32>
    %19 = vector.broadcast %18 : vector<1x128xf32> to vector<8x128xf32>
    %c0_4 = arith.constant 0 : index
    %c0_5 = arith.constant 0 : index
    %20 = vector.load %arg6[%c0_4, %c0_5] : memref<1x128xf32, #tpu.memory_space<vmem>>, vector<1x128xf32>
    %21 = vector.shape_cast %20 : vector<1x128xf32> to vector<1x128xf32>
    %22 = vector.broadcast %21 : vector<1x128xf32> to vector<8x128xf32>
    %c0_6 = arith.constant 0 : index
    %c0_7 = arith.constant 0 : index
    %23 = vector.load %arg7[%c0_6, %c0_7] : memref<1x128xf32, #tpu.memory_space<vmem>>, vector<1x128xf32>
    %24 = vector.shape_cast %23 : vector<1x128xf32> to vector<1x128xf32>
    %25 = vector.broadcast %24 : vector<1x128xf32> to vector<8x128xf32>
    %c0_8 = arith.constant 0 : index
    %c0_9 = arith.constant 0 : index
    %26 = vector.load %arg2[%c0_8, %c0_9] : memref<256x128xf32, #tpu.memory_space<vmem>>, vector<256x128xf32>
    %c0_10 = arith.constant 0 : index
    %c0_11 = arith.constant 0 : index
    %27 = vector.load %arg4[%c0_10, %c0_11] : memref<128x128xf32, #tpu.memory_space<vmem>>, vector<128x128xf32>
    %c0_12 = arith.constant 0 : index
    %c0_13 = arith.constant 0 : index
    %28 = vector.load %arg0[%c0_12, %c0_13] : memref<8x128xf32, #tpu.memory_space<vmem>>, vector<8x128xf32>
    %cst_14 = arith.constant 1.000000e+00 : f32
    %29 = vector.broadcast %cst_14 : f32 to vector<8x128xf32>
    %cst_15 = arith.constant 0.000000e+00 : f32
    %30 = vector.broadcast %cst_15 : f32 to vector<8x128xf32>
    %cst_16 = arith.constant 0.000000e+00 : f32
    %31 = vector.broadcast %cst_16 : f32 to vector<8x128xf32>
    %cst_17 = arith.constant 0.000000e+00 : f32
    %32 = vector.broadcast %cst_17 : f32 to vector<8x1xf32>
    %33 = tpu.concatenate %29, %28 in 1 : vector<8x128xf32>, vector<8x128xf32> -> vector<8x256xf32>
    %cst_18 = arith.constant dense<0.000000e+00> : vector<8x128xf32>
    %34 = tpu.matmul %33, %26, %cst_18 {dimension_numbers = #tpu.dot_dimension_numbers<[1], [0], [0], [1], [0, 0, 1, 1], [], []>} : vector<8x256xf32>, vector<256x128xf32>, vector<8x128xf32> -> vector<8x128xf32>
    %35 = arith.addf %34, %16 : vector<8x128xf32>
    %36 = math.tanh %35 : vector<8x128xf32>
    %cst_19 = arith.constant dense<0xFF800000> : vector<8xf32>
    %37 = vector.multi_reduction <maximumf>, %13, %cst_19 [1] : vector<8x128xf32> to vector<8xf32>
    %38 = vector.shape_cast %37 : vector<8xf32> to vector<8x1xf32>
    %39 = vector.broadcast %38 : vector<8x1xf32> to vector<8x128xf32>
    %40 = arith.subf %13, %39 : vector<8x128xf32>
    %41 = math.exp %40 : vector<8x128xf32>
    %cst_20 = arith.constant dense<0.000000e+00> : vector<8xf32>
    %42 = vector.multi_reduction <add>, %41, %cst_20 [1] : vector<8x128xf32> to vector<8xf32>
    %43 = vector.shape_cast %42 : vector<8xf32> to vector<8x1xf32>
    %44 = tpu.reciprocal %43 {approx = true} : vector<8x1xf32> -> vector<8x1xf32>
    %45 = vector.broadcast %44 : vector<8x1xf32> to vector<8x128xf32>
    %46 = arith.mulf %41, %45 : vector<8x128xf32>
    %cst_21 = arith.constant dense<0xFF800000> : vector<8xf32>
    %47 = vector.multi_reduction <maximumf>, %46, %cst_21 [1] : vector<8x128xf32> to vector<8xf32>
    %48 = vector.shape_cast %47 : vector<8xf32> to vector<8x1xf32>
    %49 = vector.broadcast %48 : vector<8x1xf32> to vector<8x128xf32>
    %50 = arith.cmpf oeq, %46, %49 : vector<8x128xf32>
    %c128_i32 = arith.constant 128 : i32
    %51 = vector.broadcast %c128_i32 : i32 to vector<8x128xi32>
    %52 = arith.select %50, %0, %51 : vector<8x128xi1>, vector<8x128xi32>
    %cst_22 = arith.constant dense<2147483647> : vector<8xi32>
    %53 = vector.multi_reduction <minsi>, %52, %cst_22 [1] : vector<8x128xi32> to vector<8xi32>
    %54 = vector.shape_cast %53 : vector<8xi32> to vector<8x1xi32>
    %55 = arith.sitofp %54 : vector<8x1xi32> to vector<8x1xf32>
    %56 = vector.broadcast %54 : vector<8x1xi32> to vector<8x128xi32>
    %57 = arith.cmpi eq, %0, %56 : vector<8x128xi32>
    %58 = arith.extui %57 : vector<8x128xi1> to vector<8x128xi32>
    %59 = arith.sitofp %58 : vector<8x128xi32> to vector<8x128xf32>
    %c0_i32_23 = arith.constant 0 : i32
    %60 = vector.broadcast %c0_i32_23 : i32 to vector<8x128xi32>
    %61 = arith.cmpi eq, %0, %60 : vector<8x128xi32>
    %62 = vector.shape_cast %55 : vector<8x1xf32> to vector<8x1xf32>
    %63 = vector.broadcast %62 : vector<8x1xf32> to vector<8x128xf32>
    %64 = arith.select %61, %63, %31 : vector<8x128xi1>, vector<8x128xf32>
    %c0_24 = arith.constant 0 : index
    %c0_25 = arith.constant 0 : index
    %c0_26 = arith.constant 0 : index
    %65 = vector.load %arg1[%c0_24, %c0_25, %c0_26] : memref<8x8x128xf32, #tpu.memory_space<vmem>>, vector<1x8x128xf32>
    %66 = vector.shape_cast %65 : vector<1x8x128xf32> to vector<8x128xf32>
    %67 = math.exp %46 : vector<8x128xf32>
    %cst_27 = arith.constant 0.000000e+00 : f32
    %68 = vector.broadcast %cst_27 : f32 to vector<8x128xf32>
    %69 = arith.select %4, %67, %68 : vector<8x128xi1>, vector<8x128xf32>
    %cst_28 = arith.constant dense<0.000000e+00> : vector<8xf32>
    %70 = vector.multi_reduction <add>, %69, %cst_28 [1] : vector<8x128xf32> to vector<8xf32>
    %71 = vector.shape_cast %70 : vector<8xf32> to vector<8x1xf32>
    %72 = math.log %71 : vector<8x1xf32>
    %73 = arith.cmpf oeq, %1, %66 : vector<8x128xf32>
    %cst_29 = arith.constant 0.000000e+00 : f32
    %74 = vector.broadcast %cst_29 : f32 to vector<8x128xf32>
    %75 = arith.select %73, %46, %74 : vector<8x128xi1>, vector<8x128xf32>
    %cst_30 = arith.constant dense<0.000000e+00> : vector<8xf32>
    %76 = vector.multi_reduction <add>, %75, %cst_30 [1] : vector<8x128xf32> to vector<8xf32>
    %77 = vector.shape_cast %76 : vector<8xf32> to vector<8x1xf32>
    %78 = arith.subf %72, %77 : vector<8x1xf32>
    %79 = arith.addf %32, %78 : vector<8x1xf32>
    %80 = arith.mulf %66, %22 : vector<8x128xf32>
    %81 = arith.addf %80, %25 : vector<8x128xf32>
    %82 = tpu.concatenate %81, %36 in 1 : vector<8x128xf32>, vector<8x128xf32> -> vector<8x256xf32>
    %cst_31 = arith.constant dense<0.000000e+00> : vector<8x128xf32>
    %83 = tpu.matmul %82, %26, %cst_31 {dimension_numbers = #tpu.dot_dimension_numbers<[1], [0], [0], [1], [0, 0, 1, 1], [], []>} : vector<8x256xf32>, vector<256x128xf32>, vector<8x128xf32> -> vector<8x128xf32>
    %84 = arith.addf %83, %16 : vector<8x128xf32>
    %85 = math.tanh %84 : vector<8x128xf32>
    %cst_32 = arith.constant dense<0.000000e+00> : vector<8x128xf32>
    %86 = tpu.matmul %85, %27, %cst_32 {dimension_numbers = #tpu.dot_dimension_numbers<[1], [0], [0], [1], [0, 0, 1, 1], [], []>} : vector<8x128xf32>, vector<128x128xf32>, vector<8x128xf32> -> vector<8x128xf32>
    %87 = arith.addf %86, %19 : vector<8x128xf32>
    %88 = arith.maximumf %30, %59 : vector<8x128xf32>
    %cst_33 = arith.constant 0.000000e+00 : f32
    %89 = vector.broadcast %cst_33 : f32 to vector<8x128xf32>
    %90 = arith.cmpf ogt, %88, %89 : vector<8x128xf32>
    %cst_34 = arith.constant 0xFF800000 : f32
    %91 = vector.broadcast %cst_34 : f32 to vector<8x128xf32>
    %92 = arith.select %90, %91, %87 : vector<8x128xi1>, vector<8x128xf32>
    %cst_35 = arith.constant dense<0xFF800000> : vector<8xf32>
    %93 = vector.multi_reduction <maximumf>, %92, %cst_35 [1] : vector<8x128xf32> to vector<8xf32>
    %94 = vector.shape_cast %93 : vector<8xf32> to vector<8x1xf32>
    %95 = vector.broadcast %94 : vector<8x1xf32> to vector<8x128xf32>
    %96 = arith.subf %92, %95 : vector<8x128xf32>
    %97 = math.exp %96 : vector<8x128xf32>
    %cst_36 = arith.constant dense<0.000000e+00> : vector<8xf32>
    %98 = vector.multi_reduction <add>, %97, %cst_36 [1] : vector<8x128xf32> to vector<8xf32>
    %99 = vector.shape_cast %98 : vector<8xf32> to vector<8x1xf32>
    %100 = tpu.reciprocal %99 {approx = true} : vector<8x1xf32> -> vector<8x1xf32>
    %101 = vector.broadcast %100 : vector<8x1xf32> to vector<8x128xf32>
    %102 = arith.mulf %97, %101 : vector<8x128xf32>
    %cst_37 = arith.constant dense<0xFF800000> : vector<8xf32>
    %103 = vector.multi_reduction <maximumf>, %102, %cst_37 [1] : vector<8x128xf32> to vector<8xf32>
    %104 = vector.shape_cast %103 : vector<8xf32> to vector<8x1xf32>
    %105 = vector.broadcast %104 : vector<8x1xf32> to vector<8x128xf32>
    %106 = arith.cmpf oeq, %102, %105 : vector<8x128xf32>
    %c128_i32_38 = arith.constant 128 : i32
    %107 = vector.broadcast %c128_i32_38 : i32 to vector<8x128xi32>
    %108 = arith.select %106, %0, %107 : vector<8x128xi1>, vector<8x128xi32>
    %cst_39 = arith.constant dense<2147483647> : vector<8xi32>
    %109 = vector.multi_reduction <minsi>, %108, %cst_39 [1] : vector<8x128xi32> to vector<8xi32>
    %110 = vector.shape_cast %109 : vector<8xi32> to vector<8x1xi32>
    %111 = arith.sitofp %110 : vector<8x1xi32> to vector<8x1xf32>
    %112 = vector.broadcast %110 : vector<8x1xi32> to vector<8x128xi32>
    %113 = arith.cmpi eq, %0, %112 : vector<8x128xi32>
    %114 = arith.extui %113 : vector<8x128xi1> to vector<8x128xi32>
    %115 = arith.sitofp %114 : vector<8x128xi32> to vector<8x128xf32>
    %c1_i32 = arith.constant 1 : i32
    %116 = vector.broadcast %c1_i32 : i32 to vector<8x128xi32>
    %117 = arith.cmpi eq, %0, %116 : vector<8x128xi32>
    %118 = vector.shape_cast %111 : vector<8x1xf32> to vector<8x1xf32>
    %119 = vector.broadcast %118 : vector<8x1xf32> to vector<8x128xf32>
    %120 = arith.select %117, %119, %64 : vector<8x128xi1>, vector<8x128xf32>
    %c1 = arith.constant 1 : index
    %c0_40 = arith.constant 0 : index
    %c0_41 = arith.constant 0 : index
    %121 = vector.load %arg1[%c1, %c0_40, %c0_41] : memref<8x8x128xf32, #tpu.memory_space<vmem>>, vector<1x8x128xf32>
    %122 = vector.shape_cast %121 : vector<1x8x128xf32> to vector<8x128xf32>
    %123 = math.exp %102 : vector<8x128xf32>
    %cst_42 = arith.constant 0.000000e+00 : f32
    %124 = vector.broadcast %cst_42 : f32 to vector<8x128xf32>
    %125 = arith.select %4, %123, %124 : vector<8x128xi1>, vector<8x128xf32>
    %cst_43 = arith.constant dense<0.000000e+00> : vector<8xf32>
    %126 = vector.multi_reduction <add>, %125, %cst_43 [1] : vector<8x128xf32> to vector<8xf32>
    %127 = vector.shape_cast %126 : vector<8xf32> to vector<8x1xf32>
    %128 = math.log %127 : vector<8x1xf32>
    %129 = arith.cmpf oeq, %1, %122 : vector<8x128xf32>
    %cst_44 = arith.constant 0.000000e+00 : f32
    %130 = vector.broadcast %cst_44 : f32 to vector<8x128xf32>
    %131 = arith.select %129, %102, %130 : vector<8x128xi1>, vector<8x128xf32>
    %cst_45 = arith.constant dense<0.000000e+00> : vector<8xf32>
    %132 = vector.multi_reduction <add>, %131, %cst_45 [1] : vector<8x128xf32> to vector<8xf32>
    %133 = vector.shape_cast %132 : vector<8xf32> to vector<8x1xf32>
    %134 = arith.subf %128, %133 : vector<8x1xf32>
    %135 = arith.addf %79, %134 : vector<8x1xf32>
    %136 = arith.mulf %122, %22 : vector<8x128xf32>
    %137 = arith.addf %136, %25 : vector<8x128xf32>
    %138 = tpu.concatenate %137, %85 in 1 : vector<8x128xf32>, vector<8x128xf32> -> vector<8x256xf32>
    %cst_46 = arith.constant dense<0.000000e+00> : vector<8x128xf32>
    %139 = tpu.matmul %138, %26, %cst_46 {dimension_numbers = #tpu.dot_dimension_numbers<[1], [0], [0], [1], [0, 0, 1, 1], [], []>} : vector<8x256xf32>, vector<256x128xf32>, vector<8x128xf32> -> vector<8x128xf32>
    %140 = arith.addf %139, %16 : vector<8x128xf32>
    %141 = math.tanh %140 : vector<8x128xf32>
    %cst_47 = arith.constant dense<0.000000e+00> : vector<8x128xf32>
    %142 = tpu.matmul %141, %27, %cst_47 {dimension_numbers = #tpu.dot_dimension_numbers<[1], [0], [0], [1], [0, 0, 1, 1], [], []>} : vector<8x128xf32>, vector<128x128xf32>, vector<8x128xf32> -> vector<8x128xf32>
    %143 = arith.addf %142, %19 : vector<8x128xf32>
    %144 = arith.maximumf %88, %115 : vector<8x128xf32>
    %cst_48 = arith.constant 0.000000e+00 : f32
    %145 = vector.broadcast %cst_48 : f32 to vector<8x128xf32>
    %146 = arith.cmpf ogt, %144, %145 : vector<8x128xf32>
    %cst_49 = arith.constant 0xFF800000 : f32
    %147 = vector.broadcast %cst_49 : f32 to vector<8x128xf32>
    %148 = arith.select %146, %147, %143 : vector<8x128xi1>, vector<8x128xf32>
    %cst_50 = arith.constant dense<0xFF800000> : vector<8xf32>
    %149 = vector.multi_reduction <maximumf>, %148, %cst_50 [1] : vector<8x128xf32> to vector<8xf32>
    %150 = vector.shape_cast %149 : vector<8xf32> to vector<8x1xf32>
    %151 = vector.broadcast %150 : vector<8x1xf32> to vector<8x128xf32>
    %152 = arith.subf %148, %151 : vector<8x128xf32>
    %153 = math.exp %152 : vector<8x128xf32>
    %cst_51 = arith.constant dense<0.000000e+00> : vector<8xf32>
    %154 = vector.multi_reduction <add>, %153, %cst_51 [1] : vector<8x128xf32> to vector<8xf32>
    %155 = vector.shape_cast %154 : vector<8xf32> to vector<8x1xf32>
    %156 = tpu.reciprocal %155 {approx = true} : vector<8x1xf32> -> vector<8x1xf32>
    %157 = vector.broadcast %156 : vector<8x1xf32> to vector<8x128xf32>
    %158 = arith.mulf %153, %157 : vector<8x128xf32>
    %cst_52 = arith.constant dense<0xFF800000> : vector<8xf32>
    %159 = vector.multi_reduction <maximumf>, %158, %cst_52 [1] : vector<8x128xf32> to vector<8xf32>
    %160 = vector.shape_cast %159 : vector<8xf32> to vector<8x1xf32>
    %161 = vector.broadcast %160 : vector<8x1xf32> to vector<8x128xf32>
    %162 = arith.cmpf oeq, %158, %161 : vector<8x128xf32>
    %c128_i32_53 = arith.constant 128 : i32
    %163 = vector.broadcast %c128_i32_53 : i32 to vector<8x128xi32>
    %164 = arith.select %162, %0, %163 : vector<8x128xi1>, vector<8x128xi32>
    %cst_54 = arith.constant dense<2147483647> : vector<8xi32>
    %165 = vector.multi_reduction <minsi>, %164, %cst_54 [1] : vector<8x128xi32> to vector<8xi32>
    %166 = vector.shape_cast %165 : vector<8xi32> to vector<8x1xi32>
    %167 = arith.sitofp %166 : vector<8x1xi32> to vector<8x1xf32>
    %168 = vector.broadcast %166 : vector<8x1xi32> to vector<8x128xi32>
    %169 = arith.cmpi eq, %0, %168 : vector<8x128xi32>
    %170 = arith.extui %169 : vector<8x128xi1> to vector<8x128xi32>
    %171 = arith.sitofp %170 : vector<8x128xi32> to vector<8x128xf32>
    %c2_i32 = arith.constant 2 : i32
    %172 = vector.broadcast %c2_i32 : i32 to vector<8x128xi32>
    %173 = arith.cmpi eq, %0, %172 : vector<8x128xi32>
    %174 = vector.shape_cast %167 : vector<8x1xf32> to vector<8x1xf32>
    %175 = vector.broadcast %174 : vector<8x1xf32> to vector<8x128xf32>
    %176 = arith.select %173, %175, %120 : vector<8x128xi1>, vector<8x128xf32>
    %c2 = arith.constant 2 : index
    %c0_55 = arith.constant 0 : index
    %c0_56 = arith.constant 0 : index
    %177 = vector.load %arg1[%c2, %c0_55, %c0_56] : memref<8x8x128xf32, #tpu.memory_space<vmem>>, vector<1x8x128xf32>
    %178 = vector.shape_cast %177 : vector<1x8x128xf32> to vector<8x128xf32>
    %179 = math.exp %158 : vector<8x128xf32>
    %cst_57 = arith.constant 0.000000e+00 : f32
    %180 = vector.broadcast %cst_57 : f32 to vector<8x128xf32>
    %181 = arith.select %4, %179, %180 : vector<8x128xi1>, vector<8x128xf32>
    %cst_58 = arith.constant dense<0.000000e+00> : vector<8xf32>
    %182 = vector.multi_reduction <add>, %181, %cst_58 [1] : vector<8x128xf32> to vector<8xf32>
    %183 = vector.shape_cast %182 : vector<8xf32> to vector<8x1xf32>
    %184 = math.log %183 : vector<8x1xf32>
    %185 = arith.cmpf oeq, %1, %178 : vector<8x128xf32>
    %cst_59 = arith.constant 0.000000e+00 : f32
    %186 = vector.broadcast %cst_59 : f32 to vector<8x128xf32>
    %187 = arith.select %185, %158, %186 : vector<8x128xi1>, vector<8x128xf32>
    %cst_60 = arith.constant dense<0.000000e+00> : vector<8xf32>
    %188 = vector.multi_reduction <add>, %187, %cst_60 [1] : vector<8x128xf32> to vector<8xf32>
    %189 = vector.shape_cast %188 : vector<8xf32> to vector<8x1xf32>
    %190 = arith.subf %184, %189 : vector<8x1xf32>
    %191 = arith.addf %135, %190 : vector<8x1xf32>
    %192 = arith.mulf %178, %22 : vector<8x128xf32>
    %193 = arith.addf %192, %25 : vector<8x128xf32>
    %194 = tpu.concatenate %193, %141 in 1 : vector<8x128xf32>, vector<8x128xf32> -> vector<8x256xf32>
    %cst_61 = arith.constant dense<0.000000e+00> : vector<8x128xf32>
    %195 = tpu.matmul %194, %26, %cst_61 {dimension_numbers = #tpu.dot_dimension_numbers<[1], [0], [0], [1], [0, 0, 1, 1], [], []>} : vector<8x256xf32>, vector<256x128xf32>, vector<8x128xf32> -> vector<8x128xf32>
    %196 = arith.addf %195, %16 : vector<8x128xf32>
    %197 = math.tanh %196 : vector<8x128xf32>
    %cst_62 = arith.constant dense<0.000000e+00> : vector<8x128xf32>
    %198 = tpu.matmul %197, %27, %cst_62 {dimension_numbers = #tpu.dot_dimension_numbers<[1], [0], [0], [1], [0, 0, 1, 1], [], []>} : vector<8x128xf32>, vector<128x128xf32>, vector<8x128xf32> -> vector<8x128xf32>
    %199 = arith.addf %198, %19 : vector<8x128xf32>
    %200 = arith.maximumf %144, %171 : vector<8x128xf32>
    %cst_63 = arith.constant 0.000000e+00 : f32
    %201 = vector.broadcast %cst_63 : f32 to vector<8x128xf32>
    %202 = arith.cmpf ogt, %200, %201 : vector<8x128xf32>
    %cst_64 = arith.constant 0xFF800000 : f32
    %203 = vector.broadcast %cst_64 : f32 to vector<8x128xf32>
    %204 = arith.select %202, %203, %199 : vector<8x128xi1>, vector<8x128xf32>
    %cst_65 = arith.constant dense<0xFF800000> : vector<8xf32>
    %205 = vector.multi_reduction <maximumf>, %204, %cst_65 [1] : vector<8x128xf32> to vector<8xf32>
    %206 = vector.shape_cast %205 : vector<8xf32> to vector<8x1xf32>
    %207 = vector.broadcast %206 : vector<8x1xf32> to vector<8x128xf32>
    %208 = arith.subf %204, %207 : vector<8x128xf32>
    %209 = math.exp %208 : vector<8x128xf32>
    %cst_66 = arith.constant dense<0.000000e+00> : vector<8xf32>
    %210 = vector.multi_reduction <add>, %209, %cst_66 [1] : vector<8x128xf32> to vector<8xf32>
    %211 = vector.shape_cast %210 : vector<8xf32> to vector<8x1xf32>
    %212 = tpu.reciprocal %211 {approx = true} : vector<8x1xf32> -> vector<8x1xf32>
    %213 = vector.broadcast %212 : vector<8x1xf32> to vector<8x128xf32>
    %214 = arith.mulf %209, %213 : vector<8x128xf32>
    %cst_67 = arith.constant dense<0xFF800000> : vector<8xf32>
    %215 = vector.multi_reduction <maximumf>, %214, %cst_67 [1] : vector<8x128xf32> to vector<8xf32>
    %216 = vector.shape_cast %215 : vector<8xf32> to vector<8x1xf32>
    %217 = vector.broadcast %216 : vector<8x1xf32> to vector<8x128xf32>
    %218 = arith.cmpf oeq, %214, %217 : vector<8x128xf32>
    %c128_i32_68 = arith.constant 128 : i32
    %219 = vector.broadcast %c128_i32_68 : i32 to vector<8x128xi32>
    %220 = arith.select %218, %0, %219 : vector<8x128xi1>, vector<8x128xi32>
    %cst_69 = arith.constant dense<2147483647> : vector<8xi32>
    %221 = vector.multi_reduction <minsi>, %220, %cst_69 [1] : vector<8x128xi32> to vector<8xi32>
    %222 = vector.shape_cast %221 : vector<8xi32> to vector<8x1xi32>
    %223 = arith.sitofp %222 : vector<8x1xi32> to vector<8x1xf32>
    %224 = vector.broadcast %222 : vector<8x1xi32> to vector<8x128xi32>
    %225 = arith.cmpi eq, %0, %224 : vector<8x128xi32>
    %226 = arith.extui %225 : vector<8x128xi1> to vector<8x128xi32>
    %227 = arith.sitofp %226 : vector<8x128xi32> to vector<8x128xf32>
    %c3_i32 = arith.constant 3 : i32
    %228 = vector.broadcast %c3_i32 : i32 to vector<8x128xi32>
    %229 = arith.cmpi eq, %0, %228 : vector<8x128xi32>
    %230 = vector.shape_cast %223 : vector<8x1xf32> to vector<8x1xf32>
    %231 = vector.broadcast %230 : vector<8x1xf32> to vector<8x128xf32>
    %232 = arith.select %229, %231, %176 : vector<8x128xi1>, vector<8x128xf32>
    %c3 = arith.constant 3 : index
    %c0_70 = arith.constant 0 : index
    %c0_71 = arith.constant 0 : index
    %233 = vector.load %arg1[%c3, %c0_70, %c0_71] : memref<8x8x128xf32, #tpu.memory_space<vmem>>, vector<1x8x128xf32>
    %234 = vector.shape_cast %233 : vector<1x8x128xf32> to vector<8x128xf32>
    %235 = math.exp %214 : vector<8x128xf32>
    %cst_72 = arith.constant 0.000000e+00 : f32
    %236 = vector.broadcast %cst_72 : f32 to vector<8x128xf32>
    %237 = arith.select %4, %235, %236 : vector<8x128xi1>, vector<8x128xf32>
    %cst_73 = arith.constant dense<0.000000e+00> : vector<8xf32>
    %238 = vector.multi_reduction <add>, %237, %cst_73 [1] : vector<8x128xf32> to vector<8xf32>
    %239 = vector.shape_cast %238 : vector<8xf32> to vector<8x1xf32>
    %240 = math.log %239 : vector<8x1xf32>
    %241 = arith.cmpf oeq, %1, %234 : vector<8x128xf32>
    %cst_74 = arith.constant 0.000000e+00 : f32
    %242 = vector.broadcast %cst_74 : f32 to vector<8x128xf32>
    %243 = arith.select %241, %214, %242 : vector<8x128xi1>, vector<8x128xf32>
    %cst_75 = arith.constant dense<0.000000e+00> : vector<8xf32>
    %244 = vector.multi_reduction <add>, %243, %cst_75 [1] : vector<8x128xf32> to vector<8xf32>
    %245 = vector.shape_cast %244 : vector<8xf32> to vector<8x1xf32>
    %246 = arith.subf %240, %245 : vector<8x1xf32>
    %247 = arith.addf %191, %246 : vector<8x1xf32>
    %248 = arith.mulf %234, %22 : vector<8x128xf32>
    %249 = arith.addf %248, %25 : vector<8x128xf32>
    %250 = tpu.concatenate %249, %197 in 1 : vector<8x128xf32>, vector<8x128xf32> -> vector<8x256xf32>
    %cst_76 = arith.constant dense<0.000000e+00> : vector<8x128xf32>
    %251 = tpu.matmul %250, %26, %cst_76 {dimension_numbers = #tpu.dot_dimension_numbers<[1], [0], [0], [1], [0, 0, 1, 1], [], []>} : vector<8x256xf32>, vector<256x128xf32>, vector<8x128xf32> -> vector<8x128xf32>
    %252 = arith.addf %251, %16 : vector<8x128xf32>
    %253 = math.tanh %252 : vector<8x128xf32>
    %cst_77 = arith.constant dense<0.000000e+00> : vector<8x128xf32>
    %254 = tpu.matmul %253, %27, %cst_77 {dimension_numbers = #tpu.dot_dimension_numbers<[1], [0], [0], [1], [0, 0, 1, 1], [], []>} : vector<8x128xf32>, vector<128x128xf32>, vector<8x128xf32> -> vector<8x128xf32>
    %255 = arith.addf %254, %19 : vector<8x128xf32>
    %256 = arith.maximumf %200, %227 : vector<8x128xf32>
    %cst_78 = arith.constant 0.000000e+00 : f32
    %257 = vector.broadcast %cst_78 : f32 to vector<8x128xf32>
    %258 = arith.cmpf ogt, %256, %257 : vector<8x128xf32>
    %cst_79 = arith.constant 0xFF800000 : f32
    %259 = vector.broadcast %cst_79 : f32 to vector<8x128xf32>
    %260 = arith.select %258, %259, %255 : vector<8x128xi1>, vector<8x128xf32>
    %cst_80 = arith.constant dense<0xFF800000> : vector<8xf32>
    %261 = vector.multi_reduction <maximumf>, %260, %cst_80 [1] : vector<8x128xf32> to vector<8xf32>
    %262 = vector.shape_cast %261 : vector<8xf32> to vector<8x1xf32>
    %263 = vector.broadcast %262 : vector<8x1xf32> to vector<8x128xf32>
    %264 = arith.subf %260, %263 : vector<8x128xf32>
    %265 = math.exp %264 : vector<8x128xf32>
    %cst_81 = arith.constant dense<0.000000e+00> : vector<8xf32>
    %266 = vector.multi_reduction <add>, %265, %cst_81 [1] : vector<8x128xf32> to vector<8xf32>
    %267 = vector.shape_cast %266 : vector<8xf32> to vector<8x1xf32>
    %268 = tpu.reciprocal %267 {approx = true} : vector<8x1xf32> -> vector<8x1xf32>
    %269 = vector.broadcast %268 : vector<8x1xf32> to vector<8x128xf32>
    %270 = arith.mulf %265, %269 : vector<8x128xf32>
    %cst_82 = arith.constant dense<0xFF800000> : vector<8xf32>
    %271 = vector.multi_reduction <maximumf>, %270, %cst_82 [1] : vector<8x128xf32> to vector<8xf32>
    %272 = vector.shape_cast %271 : vector<8xf32> to vector<8x1xf32>
    %273 = vector.broadcast %272 : vector<8x1xf32> to vector<8x128xf32>
    %274 = arith.cmpf oeq, %270, %273 : vector<8x128xf32>
    %c128_i32_83 = arith.constant 128 : i32
    %275 = vector.broadcast %c128_i32_83 : i32 to vector<8x128xi32>
    %276 = arith.select %274, %0, %275 : vector<8x128xi1>, vector<8x128xi32>
    %cst_84 = arith.constant dense<2147483647> : vector<8xi32>
    %277 = vector.multi_reduction <minsi>, %276, %cst_84 [1] : vector<8x128xi32> to vector<8xi32>
    %278 = vector.shape_cast %277 : vector<8xi32> to vector<8x1xi32>
    %279 = arith.sitofp %278 : vector<8x1xi32> to vector<8x1xf32>
    %280 = vector.broadcast %278 : vector<8x1xi32> to vector<8x128xi32>
    %281 = arith.cmpi eq, %0, %280 : vector<8x128xi32>
    %282 = arith.extui %281 : vector<8x128xi1> to vector<8x128xi32>
    %283 = arith.sitofp %282 : vector<8x128xi32> to vector<8x128xf32>
    %c4_i32_85 = arith.constant 4 : i32
    %284 = vector.broadcast %c4_i32_85 : i32 to vector<8x128xi32>
    %285 = arith.cmpi eq, %0, %284 : vector<8x128xi32>
    %286 = vector.shape_cast %279 : vector<8x1xf32> to vector<8x1xf32>
    %287 = vector.broadcast %286 : vector<8x1xf32> to vector<8x128xf32>
    %288 = arith.select %285, %287, %232 : vector<8x128xi1>, vector<8x128xf32>
    %c4 = arith.constant 4 : index
    %c0_86 = arith.constant 0 : index
    %c0_87 = arith.constant 0 : index
    %289 = vector.load %arg1[%c4, %c0_86, %c0_87] : memref<8x8x128xf32, #tpu.memory_space<vmem>>, vector<1x8x128xf32>
    %290 = vector.shape_cast %289 : vector<1x8x128xf32> to vector<8x128xf32>
    %291 = math.exp %270 : vector<8x128xf32>
    %cst_88 = arith.constant 0.000000e+00 : f32
    %292 = vector.broadcast %cst_88 : f32 to vector<8x128xf32>
    %293 = arith.select %4, %291, %292 : vector<8x128xi1>, vector<8x128xf32>
    %cst_89 = arith.constant dense<0.000000e+00> : vector<8xf32>
    %294 = vector.multi_reduction <add>, %293, %cst_89 [1] : vector<8x128xf32> to vector<8xf32>
    %295 = vector.shape_cast %294 : vector<8xf32> to vector<8x1xf32>
    %296 = math.log %295 : vector<8x1xf32>
    %297 = arith.cmpf oeq, %1, %290 : vector<8x128xf32>
    %cst_90 = arith.constant 0.000000e+00 : f32
    %298 = vector.broadcast %cst_90 : f32 to vector<8x128xf32>
    %299 = arith.select %297, %270, %298 : vector<8x128xi1>, vector<8x128xf32>
    %cst_91 = arith.constant dense<0.000000e+00> : vector<8xf32>
    %300 = vector.multi_reduction <add>, %299, %cst_91 [1] : vector<8x128xf32> to vector<8xf32>
    %301 = vector.shape_cast %300 : vector<8xf32> to vector<8x1xf32>
    %302 = arith.subf %296, %301 : vector<8x1xf32>
    %303 = arith.addf %247, %302 : vector<8x1xf32>
    %304 = arith.mulf %290, %22 : vector<8x128xf32>
    %305 = arith.addf %304, %25 : vector<8x128xf32>
    %306 = tpu.concatenate %305, %253 in 1 : vector<8x128xf32>, vector<8x128xf32> -> vector<8x256xf32>
    %cst_92 = arith.constant dense<0.000000e+00> : vector<8x128xf32>
    %307 = tpu.matmul %306, %26, %cst_92 {dimension_numbers = #tpu.dot_dimension_numbers<[1], [0], [0], [1], [0, 0, 1, 1], [], []>} : vector<8x256xf32>, vector<256x128xf32>, vector<8x128xf32> -> vector<8x128xf32>
    %308 = arith.addf %307, %16 : vector<8x128xf32>
    %309 = math.tanh %308 : vector<8x128xf32>
    %cst_93 = arith.constant dense<0.000000e+00> : vector<8x128xf32>
    %310 = tpu.matmul %309, %27, %cst_93 {dimension_numbers = #tpu.dot_dimension_numbers<[1], [0], [0], [1], [0, 0, 1, 1], [], []>} : vector<8x128xf32>, vector<128x128xf32>, vector<8x128xf32> -> vector<8x128xf32>
    %311 = arith.addf %310, %19 : vector<8x128xf32>
    %312 = arith.maximumf %256, %283 : vector<8x128xf32>
    %cst_94 = arith.constant 0.000000e+00 : f32
    %313 = vector.broadcast %cst_94 : f32 to vector<8x128xf32>
    %314 = arith.cmpf ogt, %312, %313 : vector<8x128xf32>
    %cst_95 = arith.constant 0xFF800000 : f32
    %315 = vector.broadcast %cst_95 : f32 to vector<8x128xf32>
    %316 = arith.select %314, %315, %311 : vector<8x128xi1>, vector<8x128xf32>
    %cst_96 = arith.constant dense<0xFF800000> : vector<8xf32>
    %317 = vector.multi_reduction <maximumf>, %316, %cst_96 [1] : vector<8x128xf32> to vector<8xf32>
    %318 = vector.shape_cast %317 : vector<8xf32> to vector<8x1xf32>
    %319 = vector.broadcast %318 : vector<8x1xf32> to vector<8x128xf32>
    %320 = arith.subf %316, %319 : vector<8x128xf32>
    %321 = math.exp %320 : vector<8x128xf32>
    %cst_97 = arith.constant dense<0.000000e+00> : vector<8xf32>
    %322 = vector.multi_reduction <add>, %321, %cst_97 [1] : vector<8x128xf32> to vector<8xf32>
    %323 = vector.shape_cast %322 : vector<8xf32> to vector<8x1xf32>
    %324 = tpu.reciprocal %323 {approx = true} : vector<8x1xf32> -> vector<8x1xf32>
    %325 = vector.broadcast %324 : vector<8x1xf32> to vector<8x128xf32>
    %326 = arith.mulf %321, %325 : vector<8x128xf32>
    %cst_98 = arith.constant dense<0xFF800000> : vector<8xf32>
    %327 = vector.multi_reduction <maximumf>, %326, %cst_98 [1] : vector<8x128xf32> to vector<8xf32>
    %328 = vector.shape_cast %327 : vector<8xf32> to vector<8x1xf32>
    %329 = vector.broadcast %328 : vector<8x1xf32> to vector<8x128xf32>
    %330 = arith.cmpf oeq, %326, %329 : vector<8x128xf32>
    %c128_i32_99 = arith.constant 128 : i32
    %331 = vector.broadcast %c128_i32_99 : i32 to vector<8x128xi32>
    %332 = arith.select %330, %0, %331 : vector<8x128xi1>, vector<8x128xi32>
    %cst_100 = arith.constant dense<2147483647> : vector<8xi32>
    %333 = vector.multi_reduction <minsi>, %332, %cst_100 [1] : vector<8x128xi32> to vector<8xi32>
    %334 = vector.shape_cast %333 : vector<8xi32> to vector<8x1xi32>
    %335 = arith.sitofp %334 : vector<8x1xi32> to vector<8x1xf32>
    %336 = vector.broadcast %334 : vector<8x1xi32> to vector<8x128xi32>
    %337 = arith.cmpi eq, %0, %336 : vector<8x128xi32>
    %338 = arith.extui %337 : vector<8x128xi1> to vector<8x128xi32>
    %339 = arith.sitofp %338 : vector<8x128xi32> to vector<8x128xf32>
    %c5_i32 = arith.constant 5 : i32
    %340 = vector.broadcast %c5_i32 : i32 to vector<8x128xi32>
    %341 = arith.cmpi eq, %0, %340 : vector<8x128xi32>
    %342 = vector.shape_cast %335 : vector<8x1xf32> to vector<8x1xf32>
    %343 = vector.broadcast %342 : vector<8x1xf32> to vector<8x128xf32>
    %344 = arith.select %341, %343, %288 : vector<8x128xi1>, vector<8x128xf32>
    %c5 = arith.constant 5 : index
    %c0_101 = arith.constant 0 : index
    %c0_102 = arith.constant 0 : index
    %345 = vector.load %arg1[%c5, %c0_101, %c0_102] : memref<8x8x128xf32, #tpu.memory_space<vmem>>, vector<1x8x128xf32>
    %346 = vector.shape_cast %345 : vector<1x8x128xf32> to vector<8x128xf32>
    %347 = math.exp %326 : vector<8x128xf32>
    %cst_103 = arith.constant 0.000000e+00 : f32
    %348 = vector.broadcast %cst_103 : f32 to vector<8x128xf32>
    %349 = arith.select %4, %347, %348 : vector<8x128xi1>, vector<8x128xf32>
    %cst_104 = arith.constant dense<0.000000e+00> : vector<8xf32>
    %350 = vector.multi_reduction <add>, %349, %cst_104 [1] : vector<8x128xf32> to vector<8xf32>
    %351 = vector.shape_cast %350 : vector<8xf32> to vector<8x1xf32>
    %352 = math.log %351 : vector<8x1xf32>
    %353 = arith.cmpf oeq, %1, %346 : vector<8x128xf32>
    %cst_105 = arith.constant 0.000000e+00 : f32
    %354 = vector.broadcast %cst_105 : f32 to vector<8x128xf32>
    %355 = arith.select %353, %326, %354 : vector<8x128xi1>, vector<8x128xf32>
    %cst_106 = arith.constant dense<0.000000e+00> : vector<8xf32>
    %356 = vector.multi_reduction <add>, %355, %cst_106 [1] : vector<8x128xf32> to vector<8xf32>
    %357 = vector.shape_cast %356 : vector<8xf32> to vector<8x1xf32>
    %358 = arith.subf %352, %357 : vector<8x1xf32>
    %359 = arith.addf %303, %358 : vector<8x1xf32>
    %360 = arith.mulf %346, %22 : vector<8x128xf32>
    %361 = arith.addf %360, %25 : vector<8x128xf32>
    %362 = tpu.concatenate %361, %309 in 1 : vector<8x128xf32>, vector<8x128xf32> -> vector<8x256xf32>
    %cst_107 = arith.constant dense<0.000000e+00> : vector<8x128xf32>
    %363 = tpu.matmul %362, %26, %cst_107 {dimension_numbers = #tpu.dot_dimension_numbers<[1], [0], [0], [1], [0, 0, 1, 1], [], []>} : vector<8x256xf32>, vector<256x128xf32>, vector<8x128xf32> -> vector<8x128xf32>
    %364 = arith.addf %363, %16 : vector<8x128xf32>
    %365 = math.tanh %364 : vector<8x128xf32>
    %cst_108 = arith.constant dense<0.000000e+00> : vector<8x128xf32>
    %366 = tpu.matmul %365, %27, %cst_108 {dimension_numbers = #tpu.dot_dimension_numbers<[1], [0], [0], [1], [0, 0, 1, 1], [], []>} : vector<8x128xf32>, vector<128x128xf32>, vector<8x128xf32> -> vector<8x128xf32>
    %367 = arith.addf %366, %19 : vector<8x128xf32>
    %368 = arith.maximumf %312, %339 : vector<8x128xf32>
    %cst_109 = arith.constant 0.000000e+00 : f32
    %369 = vector.broadcast %cst_109 : f32 to vector<8x128xf32>
    %370 = arith.cmpf ogt, %368, %369 : vector<8x128xf32>
    %cst_110 = arith.constant 0xFF800000 : f32
    %371 = vector.broadcast %cst_110 : f32 to vector<8x128xf32>
    %372 = arith.select %370, %371, %367 : vector<8x128xi1>, vector<8x128xf32>
    %cst_111 = arith.constant dense<0xFF800000> : vector<8xf32>
    %373 = vector.multi_reduction <maximumf>, %372, %cst_111 [1] : vector<8x128xf32> to vector<8xf32>
    %374 = vector.shape_cast %373 : vector<8xf32> to vector<8x1xf32>
    %375 = vector.broadcast %374 : vector<8x1xf32> to vector<8x128xf32>
    %376 = arith.subf %372, %375 : vector<8x128xf32>
    %377 = math.exp %376 : vector<8x128xf32>
    %cst_112 = arith.constant dense<0.000000e+00> : vector<8xf32>
    %378 = vector.multi_reduction <add>, %377, %cst_112 [1] : vector<8x128xf32> to vector<8xf32>
    %379 = vector.shape_cast %378 : vector<8xf32> to vector<8x1xf32>
    %380 = tpu.reciprocal %379 {approx = true} : vector<8x1xf32> -> vector<8x1xf32>
    %381 = vector.broadcast %380 : vector<8x1xf32> to vector<8x128xf32>
    %382 = arith.mulf %377, %381 : vector<8x128xf32>
    %cst_113 = arith.constant dense<0xFF800000> : vector<8xf32>
    %383 = vector.multi_reduction <maximumf>, %382, %cst_113 [1] : vector<8x128xf32> to vector<8xf32>
    %384 = vector.shape_cast %383 : vector<8xf32> to vector<8x1xf32>
    %385 = vector.broadcast %384 : vector<8x1xf32> to vector<8x128xf32>
    %386 = arith.cmpf oeq, %382, %385 : vector<8x128xf32>
    %c128_i32_114 = arith.constant 128 : i32
    %387 = vector.broadcast %c128_i32_114 : i32 to vector<8x128xi32>
    %388 = arith.select %386, %0, %387 : vector<8x128xi1>, vector<8x128xi32>
    %cst_115 = arith.constant dense<2147483647> : vector<8xi32>
    %389 = vector.multi_reduction <minsi>, %388, %cst_115 [1] : vector<8x128xi32> to vector<8xi32>
    %390 = vector.shape_cast %389 : vector<8xi32> to vector<8x1xi32>
    %391 = arith.sitofp %390 : vector<8x1xi32> to vector<8x1xf32>
    %392 = vector.broadcast %390 : vector<8x1xi32> to vector<8x128xi32>
    %393 = arith.cmpi eq, %0, %392 : vector<8x128xi32>
    %394 = arith.extui %393 : vector<8x128xi1> to vector<8x128xi32>
    %395 = arith.sitofp %394 : vector<8x128xi32> to vector<8x128xf32>
    %c6_i32 = arith.constant 6 : i32
    %396 = vector.broadcast %c6_i32 : i32 to vector<8x128xi32>
    %397 = arith.cmpi eq, %0, %396 : vector<8x128xi32>
    %398 = vector.shape_cast %391 : vector<8x1xf32> to vector<8x1xf32>
    %399 = vector.broadcast %398 : vector<8x1xf32> to vector<8x128xf32>
    %400 = arith.select %397, %399, %344 : vector<8x128xi1>, vector<8x128xf32>
    %c6 = arith.constant 6 : index
    %c0_116 = arith.constant 0 : index
    %c0_117 = arith.constant 0 : index
    %401 = vector.load %arg1[%c6, %c0_116, %c0_117] : memref<8x8x128xf32, #tpu.memory_space<vmem>>, vector<1x8x128xf32>
    %402 = vector.shape_cast %401 : vector<1x8x128xf32> to vector<8x128xf32>
    %403 = math.exp %382 : vector<8x128xf32>
    %cst_118 = arith.constant 0.000000e+00 : f32
    %404 = vector.broadcast %cst_118 : f32 to vector<8x128xf32>
    %405 = arith.select %4, %403, %404 : vector<8x128xi1>, vector<8x128xf32>
    %cst_119 = arith.constant dense<0.000000e+00> : vector<8xf32>
    %406 = vector.multi_reduction <add>, %405, %cst_119 [1] : vector<8x128xf32> to vector<8xf32>
    %407 = vector.shape_cast %406 : vector<8xf32> to vector<8x1xf32>
    %408 = math.log %407 : vector<8x1xf32>
    %409 = arith.cmpf oeq, %1, %402 : vector<8x128xf32>
    %cst_120 = arith.constant 0.000000e+00 : f32
    %410 = vector.broadcast %cst_120 : f32 to vector<8x128xf32>
    %411 = arith.select %409, %382, %410 : vector<8x128xi1>, vector<8x128xf32>
    %cst_121 = arith.constant dense<0.000000e+00> : vector<8xf32>
    %412 = vector.multi_reduction <add>, %411, %cst_121 [1] : vector<8x128xf32> to vector<8xf32>
    %413 = vector.shape_cast %412 : vector<8xf32> to vector<8x1xf32>
    %414 = arith.subf %408, %413 : vector<8x1xf32>
    %415 = arith.addf %359, %414 : vector<8x1xf32>
    %416 = arith.mulf %402, %22 : vector<8x128xf32>
    %417 = arith.addf %416, %25 : vector<8x128xf32>
    %418 = tpu.concatenate %417, %365 in 1 : vector<8x128xf32>, vector<8x128xf32> -> vector<8x256xf32>
    %cst_122 = arith.constant dense<0.000000e+00> : vector<8x128xf32>
    %419 = tpu.matmul %418, %26, %cst_122 {dimension_numbers = #tpu.dot_dimension_numbers<[1], [0], [0], [1], [0, 0, 1, 1], [], []>} : vector<8x256xf32>, vector<256x128xf32>, vector<8x128xf32> -> vector<8x128xf32>
    %420 = arith.addf %419, %16 : vector<8x128xf32>
    %421 = math.tanh %420 : vector<8x128xf32>
    %cst_123 = arith.constant dense<0.000000e+00> : vector<8x128xf32>
    %422 = tpu.matmul %421, %27, %cst_123 {dimension_numbers = #tpu.dot_dimension_numbers<[1], [0], [0], [1], [0, 0, 1, 1], [], []>} : vector<8x128xf32>, vector<128x128xf32>, vector<8x128xf32> -> vector<8x128xf32>
    %423 = arith.addf %422, %19 : vector<8x128xf32>
    %424 = arith.maximumf %368, %395 : vector<8x128xf32>
    %cst_124 = arith.constant 0.000000e+00 : f32
    %425 = vector.broadcast %cst_124 : f32 to vector<8x128xf32>
    %426 = arith.cmpf ogt, %424, %425 : vector<8x128xf32>
    %cst_125 = arith.constant 0xFF800000 : f32
    %427 = vector.broadcast %cst_125 : f32 to vector<8x128xf32>
    %428 = arith.select %426, %427, %423 : vector<8x128xi1>, vector<8x128xf32>
    %cst_126 = arith.constant dense<0xFF800000> : vector<8xf32>
    %429 = vector.multi_reduction <maximumf>, %428, %cst_126 [1] : vector<8x128xf32> to vector<8xf32>
    %430 = vector.shape_cast %429 : vector<8xf32> to vector<8x1xf32>
    %431 = vector.broadcast %430 : vector<8x1xf32> to vector<8x128xf32>
    %432 = arith.subf %428, %431 : vector<8x128xf32>
    %433 = math.exp %432 : vector<8x128xf32>
    %cst_127 = arith.constant dense<0.000000e+00> : vector<8xf32>
    %434 = vector.multi_reduction <add>, %433, %cst_127 [1] : vector<8x128xf32> to vector<8xf32>
    %435 = vector.shape_cast %434 : vector<8xf32> to vector<8x1xf32>
    %436 = tpu.reciprocal %435 {approx = true} : vector<8x1xf32> -> vector<8x1xf32>
    %437 = vector.broadcast %436 : vector<8x1xf32> to vector<8x128xf32>
    %438 = arith.mulf %433, %437 : vector<8x128xf32>
    %cst_128 = arith.constant dense<0xFF800000> : vector<8xf32>
    %439 = vector.multi_reduction <maximumf>, %438, %cst_128 [1] : vector<8x128xf32> to vector<8xf32>
    %440 = vector.shape_cast %439 : vector<8xf32> to vector<8x1xf32>
    %441 = vector.broadcast %440 : vector<8x1xf32> to vector<8x128xf32>
    %442 = arith.cmpf oeq, %438, %441 : vector<8x128xf32>
    %c128_i32_129 = arith.constant 128 : i32
    %443 = vector.broadcast %c128_i32_129 : i32 to vector<8x128xi32>
    %444 = arith.select %442, %0, %443 : vector<8x128xi1>, vector<8x128xi32>
    %cst_130 = arith.constant dense<2147483647> : vector<8xi32>
    %445 = vector.multi_reduction <minsi>, %444, %cst_130 [1] : vector<8x128xi32> to vector<8xi32>
    %446 = vector.shape_cast %445 : vector<8xi32> to vector<8x1xi32>
    %447 = arith.sitofp %446 : vector<8x1xi32> to vector<8x1xf32>
    %c7_i32 = arith.constant 7 : i32
    %448 = vector.broadcast %c7_i32 : i32 to vector<8x128xi32>
    %449 = arith.cmpi eq, %0, %448 : vector<8x128xi32>
    %450 = vector.shape_cast %447 : vector<8x1xf32> to vector<8x1xf32>
    %451 = vector.broadcast %450 : vector<8x1xf32> to vector<8x128xf32>
    %452 = arith.select %449, %451, %400 : vector<8x128xi1>, vector<8x128xf32>
    %c7 = arith.constant 7 : index
    %c0_131 = arith.constant 0 : index
    %c0_132 = arith.constant 0 : index
    %453 = vector.load %arg1[%c7, %c0_131, %c0_132] : memref<8x8x128xf32, #tpu.memory_space<vmem>>, vector<1x8x128xf32>
    %454 = vector.shape_cast %453 : vector<1x8x128xf32> to vector<8x128xf32>
    %455 = math.exp %438 : vector<8x128xf32>
    %cst_133 = arith.constant 0.000000e+00 : f32
    %456 = vector.broadcast %cst_133 : f32 to vector<8x128xf32>
    %457 = arith.select %4, %455, %456 : vector<8x128xi1>, vector<8x128xf32>
    %cst_134 = arith.constant dense<0.000000e+00> : vector<8xf32>
    %458 = vector.multi_reduction <add>, %457, %cst_134 [1] : vector<8x128xf32> to vector<8xf32>
    %459 = vector.shape_cast %458 : vector<8xf32> to vector<8x1xf32>
    %460 = math.log %459 : vector<8x1xf32>
    %461 = arith.cmpf oeq, %1, %454 : vector<8x128xf32>
    %cst_135 = arith.constant 0.000000e+00 : f32
    %462 = vector.broadcast %cst_135 : f32 to vector<8x128xf32>
    %463 = arith.select %461, %438, %462 : vector<8x128xi1>, vector<8x128xf32>
    %cst_136 = arith.constant dense<0.000000e+00> : vector<8xf32>
    %464 = vector.multi_reduction <add>, %463, %cst_136 [1] : vector<8x128xf32> to vector<8xf32>
    %465 = vector.shape_cast %464 : vector<8xf32> to vector<8x1xf32>
    %466 = arith.subf %460, %465 : vector<8x1xf32>
    %467 = arith.addf %415, %466 : vector<8x1xf32>
    %468 = arith.mulf %467, %8 : vector<8x1xf32>
    %cst_137 = arith.constant dense<0.000000e+00> : vector<1xf32>
    %469 = vector.multi_reduction <add>, %468, %cst_137 [0] : vector<8x1xf32> to vector<1xf32>
    %470 = vector.shape_cast %469 : vector<1xf32> to vector<1x1xf32>
    %cst_138 = arith.constant 2.500000e-01 : f32
    %471 = vector.broadcast %cst_138 : f32 to vector<1x1xf32>
    %472 = arith.mulf %470, %471 : vector<1x1xf32>
    %c0_139 = arith.constant 0 : index
    %c0_140 = arith.constant 0 : index
    %473 = vector.load %arg8[%c0_139, %c0_140] : memref<1x1xf32, #tpu.memory_space<vmem>>, vector<1x1xf32>
    tpu.vector_store %arg8[%c0_139, %c0_140], %472 {strides = array<i32>} : memref<1x1xf32, #tpu.memory_space<vmem>>, vector<1x1xf32>,
    %c0_141 = arith.constant 0 : index
    %c0_142 = arith.constant 0 : index
    %474 = vector.load %arg9[%c0_141, %c0_142] : memref<8x128xf32, #tpu.memory_space<vmem>>, vector<8x128xf32>
    tpu.vector_store %arg9[%c0_141, %c0_142], %452 {strides = array<i32>} : memref<8x128xf32, #tpu.memory_space<vmem>>, vector<8x128xf32>,
    return
  }
}

</mosaic_0001>

<bundles_post_ra>
// kernel: tpu_custom_call.1
= control target key start
LH: loop header
LB: loop body
LE: loop exit
PB: predicated region body
PF: predicated region fallthrough
CT: control target
= control target key end

     0   :  { %15 = vsyncpa [#allocation3], 0  ;;  %s3684_s0 = inlined_call_operand.hbm [shape: f32[8,128], index: 0, kind: input, shape index: {}]   ;;  %s3685_s1 = inlined_call_operand.hbm [shape: f32[8,8,128], index: 1, kind: input, shape index: {}]   ;;  %s3686_s2 = inlined_call_operand.hbm [shape: f32[256,128], index: 2, kind: input, shape index: {}]   ;;  %s3687_s3 = inlined_call_operand.vmem [shape: f32[1,128], index: 3, kind: input, shape index: {}]   ;;  %s3688_s4 = inlined_call_operand.hbm [shape: f32[128,128], index: 4, kind: input, shape index: {}]   ;;  %s3689_s5 = inlined_call_operand.vmem [shape: f32[1,128], index: 5, kind: input, shape index: {}]   ;;  %s3690_s6 = inlined_call_operand.vmem [shape: f32[1,128], index: 6, kind: input, shape index: {}]   ;;  %s3691_s7 = inlined_call_operand.vmem [shape: f32[1,128], index: 7, kind: input, shape index: {}]   ;;  %s3692_s8 = inlined_call_operand.hbm [shape: f32[1,1], index: 8, kind: output, shape index: {0}]   ;;  %s3693_s9 = inlined_call_operand.hbm [shape: f32[8,128], index: 9, kind: output, shape index: {1}]  }
   0x1   :  { %16 = vsyncpa [#allocation6], 0 }
   0x2   :  { %17 = vsyncpa [#allocation9], 0 }
   0x3   :  { %18 = vsyncpa [#allocation4], 0 }
   0x4   :  { %19 = vsyncpa [#allocation12], 0  ;;  %s3008_s30 = smov [#allocation5]   ;;  %s2866_s13 = scalar_lea.hbm %s3685_s1, 1024 }
   0x5   :  { %s35_s10 = sshll.u32 %s3008_s30, 4  ;;  %p2867_p0 = scmp.ne.s32.totalorder %s3685_s1, %s2866_s13  ;;  %s36_s10 = int_to_ptr.vmem [resolvable:$true] %s35_s10 }
   0x6   :  { %p2870_p1 = scmp.lt.u32.totalorder %s2866_s13, %s3685_s1 }
   0x8   :  { %p2872_p2 = pnand %p2870_p1, %p2867_p0 }
   0xa   :  { %2875 = shalt.err (!%p2872_p2)
}
   0xb   :  { %s2876_s18 = scalar_lea.vmem %s36_s10, 1024  ;;  %p2881_p4 = scmp.lt.s32.totalorder %s36_s10, %s36_s10 }
   0xc   :  { %p2877_p3 = scmp.ne.s32.totalorder %s36_s10, %s2876_s18  ;;  %p2882_p5 = scmp.lt.s32.totalorder %s2876_s18, %s2876_s18 }
   0xe   :  { %p2883_p6 = por %p2882_p5, %p2881_p4 }
  0x10   :  { %p2884_p7 = pnand %p2883_p6, %p2877_p3 }
  0x12   :  { %2887 = shalt.err (!%p2884_p7)
}
  0x13   :  { %s3009_s19 = smov 128   ;;  %s3010_s20 = smov 8  }
  0x14   :  { %41 = dma.hbm_to_vmem [thread:$0]  %s3685_s1, 1024, %s36_s10, [#allocation6], %s3009_s19, %s3009_s19, %s3010_s20  }
  0x15   :  { %s3011_s23 = smov [#allocation2]   ;;  %s3012_s25 = smov [#allocation7]  }
  0x16   :  { %s26_s24 = sshll.u32 %s3011_s23, 4  ;;  %s47_s26 = sshll.u32 %s3012_s25, 4  ;;  %s27_s24 = int_to_ptr.vmem [resolvable:$true] %s26_s24  ;;  %s48_s26 = int_to_ptr.vmem [resolvable:$true] %s47_s26 }
  0x17   :  { %s2888_s29 = scalar_lea.hbm %s3684_s0, 128 }
  0x18   :  { %p2889_p8 = scmp.ne.s32.totalorder %s3684_s0, %s2888_s29  ;;  %p2892_p9 = scmp.lt.u32.totalorder %s2888_s29, %s3684_s0 }
  0x1a   :  { %p2894_p10 = pnand %p2892_p9, %p2889_p8 }
  0x1c   :  { %2897 = shalt.err (!%p2894_p10)
}
  0x1d   :  { %s2898_s1 = scalar_lea.vmem %s27_s24, 128  ;;  %p2903_p12 = scmp.lt.s32.totalorder %s27_s24, %s27_s24 }
  0x1e   :  { %p2899_p11 = scmp.ne.s32.totalorder %s27_s24, %s2898_s1  ;;  %p2904_p13 = scmp.lt.s32.totalorder %s2898_s1, %s2898_s1 }
  0x20   :  { %p2905_p0 = por %p2904_p13, %p2903_p12 }
  0x22   :  { %p2906_p1 = pnand %p2905_p0, %p2899_p11 }
  0x24   :  { %2909 = shalt.err (!%p2906_p1)
}
  0x25   :  { %29 = dma.hbm_to_vmem [thread:$0]  %s3684_s0, 128, %s27_s24, [#allocation3]  }
  0x26   :  { %s2910_s17 = scalar_lea.hbm %s3686_s2, 4096 }
  0x27   :  { %p2911_p2 = scmp.ne.s32.totalorder %s3686_s2, %s2910_s17  ;;  %p2914_p3 = scmp.lt.u32.totalorder %s2910_s17, %s3686_s2 }
  0x29   :  { %p2916_p4 = pnand %p2914_p3, %p2911_p2 }
  0x2b   :  { %2919 = shalt.err (!%p2916_p4)
}
  0x2c   :  { %s2920_s25 = scalar_lea.vmem %s48_s26, 4096  ;;  %p2925_p6 = scmp.lt.s32.totalorder %s48_s26, %s48_s26 }
  0x2d   :  { %p2921_p5 = scmp.ne.s32.totalorder %s48_s26, %s2920_s25  ;;  %p2926_p7 = scmp.lt.s32.totalorder %s2920_s25, %s2920_s25 }
  0x2f   :  { %p2927_p8 = por %p2926_p7, %p2925_p6 }
  0x31   :  { %p2928_p9 = pnand %p2927_p8, %p2921_p5 }
  0x33   :  { %2931 = shalt.err (!%p2928_p9)
}
  0x34   :  { %53 = dma.hbm_to_vmem [thread:$0]  %s3686_s2, 4096, %s48_s26, [#allocation6], %s3009_s19, %s3009_s19, %s3010_s20  }
  0x35   :  { %s3013_s27 = smov [#allocation8]   ;;  %s2932_s11 = scalar_lea.hbm %s3688_s4, 2048 }
  0x36   :  { %s61_s28 = sshll.u32 %s3013_s27, 4  ;;  %p2933_p10 = scmp.ne.s32.totalorder %s3688_s4, %s2932_s11  ;;  %s62_s28 = int_to_ptr.vmem [resolvable:$true] %s61_s28 }
  0x37   :  { %p2936_p11 = scmp.lt.u32.totalorder %s2932_s11, %s3688_s4 }
  0x39   :  { %p2938_p12 = pnand %p2936_p11, %p2933_p10 }
  0x3b   :  { %2941 = shalt.err (!%p2938_p12)
}
  0x3c   :  { %s2942_s14 = scalar_lea.vmem %s62_s28, 2048  ;;  %p2947_p0 = scmp.lt.s32.totalorder %s62_s28, %s62_s28 }
  0x3d   :  { %p2943_p13 = scmp.ne.s32.totalorder %s62_s28, %s2942_s14  ;;  %p2948_p1 = scmp.lt.s32.totalorder %s2942_s14, %s2942_s14 }
  0x3f   :  { %p2949_p2 = por %p2948_p1, %p2947_p0 }
  0x41   :  { %p2950_p3 = pnand %p2949_p2, %p2943_p13 }
  0x43   :  { %2953 = shalt.err (!%p2950_p3)
}
  0x44   :  { %67 = dma.hbm_to_vmem [thread:$0]  %s3688_s4, 2048, %s62_s28, [#allocation9], %s3009_s19, %s3009_s19, %s3010_s20  }
  0x45   :  { %2998 = dma.done.wait [#allocation3], 128  }
  0x46   :  { %2999 = vsyncadd [#allocation3], 4294967168 }
  0x47   :  { %3000 = dma.done.wait [#allocation6], 5120  }
  0x48   :  { %3001 = vsyncadd [#allocation6], 4294962176  ;;  %v86_v0 = vlaneseq }
  0x49   :  { %3002 = dma.done.wait [#allocation9], 2048  }
  0x4a   :  { %3003 = vsyncadd [#allocation9], 4294965248  ;;  %v3129_v1 = vand.u32 127, %v86_v0  ;;  %v3014_v2 = vmov -inf   ;;  %v141_v4 = vld [vmem:[#allocation7 + $0x80] sm:$0xff]  ;;  %v142_v5 = vld [vmem:[#allocation7 + $0x88] sm:$0xff] }
  0x4b   :  { %v125_v6 = vld [vmem:[#allocation7] sm:$0xff]  ;;  %v3137_v7 = vpack.c.bf16 %v142_v5, %v141_v4  ;;  %v126_v8 = vld [vmem:[#allocation7 + $0x8] sm:$0xff]  ;;  %v143_v9 = vld [vmem:[#allocation7 + $0x90] sm:$0xff]  ;;  %v3015_v53 = vmov 1.0   ;;  %vm3017_vm1 = vmmov 0  }
  0x4c   :  { %vm95_vm0 = vcmp.eq.s32.totalorder %v3129_v1, 0  ;;  %v144_v10 = vld [vmem:[#allocation7 + $0x98] sm:$0xff]  ;;  %v3139_v11 = vpack.c.bf16 %v126_v8, %v125_v6  ;;  %v127_v13 = vld [vmem:[#allocation7 + $0x10] sm:$0xff]  ;;  %v145_v15 = vld [vmem:[#allocation7 + $0xa0] sm:$0xff]  ;;  %vm468_vm8 = vcmp.eq.s32.totalorder %v3129_v1, 1  ;;  %vm662_vm13 = vcmp.eq.s32.totalorder %v3129_v1, 2 }
  0x4d   :  { %v3134_v3 = vsel %vm95_vm0, 1.0, %v3014_v2  ;;  %v3141_v12 = vpack.c.bf16 %v144_v10, %v143_v9  ;;  %v128_v14 = vld [vmem:[#allocation7 + $0x18] sm:$0xff]  ;;  %2345 = vmatprep.subr.bf16.mxu0 %v3137_v7  ;;  %v146_v16 = vld [vmem:[#allocation7 + $0xa8] sm:$0xff]  ;;  %2377 = vmatprep.subr.bf16.mxu1 %v3137_v7  ;;  %v129_v19 = vld [vmem:[#allocation7 + $0x20] sm:$0xff] }
  0x4e   :  { %245 = vmax.xlane.f32.xlu0 %v3134_v3  ;;  %2347 = vmatpush3.bf16.msra.mxu0 %v3139_v11  ;;  %v3146_v17 = vpack.c.bf16 %v128_v14, %v127_v13  ;;  %v3150_v18 = vpack.c.bf16 %v146_v16, %v145_v15  ;;  %v130_v20 = vld [vmem:[#allocation7 + $0x28] sm:$0xff]  ;;  %v147_v21 = vld [vmem:[#allocation7 + $0xb0] sm:$0xff]  ;;  %v148_v22 = vld [vmem:[#allocation7 + $0xb8] sm:$0xff]  ;;  %v3016_v16 = vmov 0.0|0.0  }
  0x4f   :  { %2379 = vmatpush3.bf16.msra.mxu1 %v3139_v11  ;;  %2349 = vmatprep.subr.bf16.mxu0 %v3141_v12  ;;  %v3154_v23 = vpack.c.bf16 %v130_v20, %v129_v19  ;;  %v3158_v24 = vpack.c.bf16 %v148_v22, %v147_v21  ;;  %v131_v25 = vld [vmem:[#allocation7 + $0x30] sm:$0xff]  ;;  %v132_v26 = vld [vmem:[#allocation7 + $0x38] sm:$0xff]  ;;  %v149_v27 = vld [vmem:[#allocation7 + $0xc0] sm:$0xff] }
  0x50   :  { %2381 = vmatprep.subr.bf16.mxu1 %v3141_v12  ;;  %v150_v28 = vld [vmem:[#allocation7 + $0xc8] sm:$0xff]  ;;  %v173_v29 = vld [vmem:[#allocation2] sm:$0xff]  ;;  %v3162_v30 = vpack.c.bf16 %v132_v26, %v131_v25  ;;  %v133_v32 = vld [vmem:[#allocation7 + $0x40] sm:$0xff] }
  0x51   :  { %238 = vmatprep.mubr.f32.mxu0 %v173_v29  ;;  %v3166_v31 = vpack.c.bf16 %v150_v28, %v149_v27  ;;  %v134_v33 = vld [vmem:[#allocation7 + $0x48] sm:$0xff]  ;;  %v151_v34 = vld [vmem:[#allocation7 + $0xd0] sm:$0xff]  ;;  %v152_v35 = vld [vmem:[#allocation7 + $0xd8] sm:$0xff] }
  0x52   :  { %2351 = vmatpush3.bf16.msra.mxu0 %v3146_v17  ;;  %v3170_v36 = vpack.c.bf16 %v134_v33, %v133_v32  ;;  %v3174_v37 = vpack.c.bf16 %v152_v35, %v151_v34  ;;  %v135_v38 = vld [vmem:[#allocation7 + $0x50] sm:$0xff]  ;;  %v136_v39 = vld [vmem:[#allocation7 + $0x58] sm:$0xff]  ;;  %v153_v40 = vld [vmem:[#allocation7 + $0xe0] sm:$0xff] }
  0x53   :  { %2383 = vmatpush3.bf16.msra.mxu1 %v3146_v17  ;;  %2353 = vmatprep.subr.bf16.mxu0 %v3150_v18  ;;  %v154_v41 = vld [vmem:[#allocation7 + $0xe8] sm:$0xff]  ;;  %v3178_v42 = vpack.c.bf16 %v136_v39, %v135_v38  ;;  %v137_v44 = vld [vmem:[#allocation7 + $0x60] sm:$0xff]  ;;  %v155_v46 = vld [vmem:[#allocation7 + $0xf0] sm:$0xff]  ;;  %v3018_v39 = vmov 0.0  }
  0x54   :  { %2385 = vmatprep.subr.bf16.mxu1 %v3150_v18  ;;  %v3182_v43 = vpack.c.bf16 %v154_v41, %v153_v40  ;;  %v138_v45 = vld [vmem:[#allocation7 + $0x68] sm:$0xff]  ;;  %v156_v47 = vld [vmem:[#allocation7 + $0xf8] sm:$0xff]  ;;  %v139_v50 = vld [vmem:[#allocation7 + $0x70] sm:$0xff] }
  0x55   :  { %v3186_v48 = vpack.c.bf16 %v138_v45, %v137_v44  ;;  %v3190_v49 = vpack.c.bf16 %v156_v47, %v155_v46  ;;  %v140_v51 = vld [vmem:[#allocation7 + $0x78] sm:$0xff]  ;;  %v277_v2 = vld [vmem:[#allocation5] sm:$0xff]  ;;  %v158_v14 = vld [vmem:[#allocation8 + $0x8] sm:$0xff] }
  0x56   :  { %2355 = vmatpush3.bf16.msra.mxu0 %v3154_v23  ;;  %v3194_v52 = vpack.c.bf16 %v140_v51, %v139_v50  ;;  %v3206_v59 = vld [vmem:[%s3687_s3] ss:$0 sm:$0xff]  ;;  %v157_v13 = vld [vmem:[#allocation8] sm:$0xff]  ;;  %v159_v15 = vld [vmem:[#allocation8 + $0x10] sm:$0xff] }
  0x57   :  { %2387 = vmatpush3.bf16.msra.mxu1 %v3154_v23  ;;  %2357 = vmatprep.subr.bf16.mxu0 %v3158_v24  ;;  %v3212_v63 = vld [vmem:[%s3690_s6] ss:$0 sm:$0xff]  ;;  %v3241_v19 = vpack.c.bf16 %v158_v14, %v157_v13  ;;  %v161_v22 = vld [vmem:[#allocation8 + $0x20] sm:$0xff]  ;;  %v162_v25 = vld [vmem:[#allocation8 + $0x28] sm:$0xff] }
  0x58   :  { %2389 = vmatprep.subr.bf16.mxu1 %v3158_v24  ;;  %v3218_v4 = vld [vmem:[%s3691_s7] ss:$0 sm:$0xff]  ;;  %v3248_v26 = vpack.c.bf16 %v162_v25, %v161_v22  ;;  %v163_v27 = vld [vmem:[#allocation8 + $0x30] sm:$0xff]  ;;  %v165_v32 = vld [vmem:[#allocation8 + $0x40] sm:$0xff] }
  0x59   :  { %v160_v20 = vld [vmem:[#allocation8 + $0x18] sm:$0xff]  ;;  %v166_v33 = vld [vmem:[#allocation8 + $0x48] sm:$0xff]  ;;  %v167_v34 = vld [vmem:[#allocation8 + $0x50] sm:$0xff] }
  0x5a   :  { %2359 = vmatpush3.bf16.msra.mxu0 %v3162_v30  ;;  %v3244_v21 = vpack.c.bf16 %v160_v20, %v159_v15  ;;  %v164_v28 = vld [vmem:[#allocation8 + $0x38] sm:$0xff]  ;;  %v3257_v35 = vpack.c.bf16 %v166_v33, %v165_v32  ;;  %v169_v41 = vld [vmem:[#allocation8 + $0x60] sm:$0xff]  ;;  %v170_v44 = vld [vmem:[#allocation8 + $0x68] sm:$0xff] }
  0x5b   :  { %2391 = vmatpush3.bf16.msra.mxu1 %v3162_v30  ;;  %2361 = vmatprep.subr.bf16.mxu0 %v3166_v31  ;;  %v3252_v29 = vpack.c.bf16 %v164_v28, %v163_v27  ;;  %v168_v38 = vld [vmem:[#allocation8 + $0x58] sm:$0xff]  ;;  %v3266_v45 = vpack.c.bf16 %v170_v44, %v169_v41  ;;  %v171_v46 = vld [vmem:[#allocation8 + $0x70] sm:$0xff]  ;;  %v471_v44 = vld [vmem:[#allocation5 + $0x8] sm:$0xff] }
  0x5c   :  { %2393 = vmatprep.subr.bf16.mxu1 %v3166_v31  ;;  %v3262_v40 = vpack.c.bf16 %v168_v38, %v167_v34  ;;  %v172_v47 = vld [vmem:[#allocation8 + $0x78] sm:$0xff] }
  0x5d   :  { %v3270_v50 = vpack.c.bf16 %v172_v47, %v171_v46  ;;  %v3301_v22 = vld [vmem:[%s3689_s5] ss:$0 sm:$0xff]  ;;  %v485_v46 = vmul.f32 %v3212_v63, %v471_v44 }
  0x5e   :  { %2363 = vmatpush3.bf16.msra.mxu0 %v3170_v36 }
  0x5f   :  { %2395 = vmatpush3.bf16.msra.mxu1 %v3170_v36  ;;  %2365 = vmatprep.subr.bf16.mxu0 %v3174_v37  ;;  %v486_v47 = vadd.f32 %v3218_v4, %v485_v46 }
  0x60   :  { %2397 = vmatprep.subr.bf16.mxu1 %v3174_v37 }
  0x62   :  { %2367 = vmatpush3.bf16.msra.mxu0 %v3178_v42 }
  0x63   :  { %2399 = vmatpush3.bf16.msra.mxu1 %v3178_v42  ;;  %2369 = vmatprep.subr.bf16.mxu0 %v3182_v43 }
  0x64   :  { %2401 = vmatprep.subr.bf16.mxu1 %v3182_v43 }
  0x66   :  { %2371 = vmatpush3.bf16.msra.mxu0 %v3186_v48 }
  0x67   :  { %2403 = vmatpush3.bf16.msra.mxu1 %v3186_v48  ;;  %2373 = vmatprep.subr.bf16.mxu0 %v3190_v49 }
  0x68   :  { %2405 = vmatprep.subr.bf16.mxu1 %v3190_v49 }
  0x6a   :  { %2375 = vmatpush3.bf16.msra.mxu0 %v3194_v52 }
  0x6b   :  { %2407 = vmatpush3.bf16.msra.mxu1 %v3194_v52  ;;  %2408 = vmatprep.subr.bf16.mxu0 %v3016_v16 }
  0x6c   :  { %2433 = vmatprep.subr.bf16.mxu1 %v3137_v7 }
  0x6d   :  { %239 = vmatmul.mubr.f32.vlgmr.msra.gmra.mrb[0].mxu0 %v3015_v53 }
  0x6e   :  { %2410 = vmatpush3.bf16.msra.mxu0 %v3241_v19  ;;  %2131 = vmatprep.mubr.msk.f32.mxu0 %vm3017_vm1, %v3018_v39 }
  0x6f   :  { %2411 = vmatprep.subr.bf16.mxu0 %v3016_v16 }
  0x72   :  { %2413 = vmatpush3.bf16.msra.mxu0 %v3244_v21 }
  0x73   :  { %2414 = vmatprep.subr.bf16.mxu0 %v3016_v16 }
  0x76   :  { %2416 = vmatpush3.bf16.msra.mxu0 %v3248_v26 }
  0x77   :  { %2417 = vmatprep.subr.bf16.mxu0 %v3016_v16 }
  0x7a   :  { %2419 = vmatpush3.bf16.msra.mxu0 %v3252_v29 }
  0x7b   :  { %2420 = vmatprep.subr.bf16.mxu0 %v3016_v16 }
  0x7e   :  { %2422 = vmatpush3.bf16.msra.mxu0 %v3257_v35 }
  0x7f   :  { %2423 = vmatprep.subr.bf16.mxu0 %v3016_v16 }
  0x82   :  { %2425 = vmatpush3.bf16.msra.mxu0 %v3262_v40 }
  0x83   :  { %2426 = vmatprep.subr.bf16.mxu0 %v3016_v16 }
  0x86   :  { %2428 = vmatpush3.bf16.msra.mxu0 %v3266_v45 }
  0x87   :  { %2429 = vmatprep.subr.bf16.mxu0 %v3016_v16 }
  0x8a   :  { %2431 = vmatpush3.bf16.msra.mxu0 %v3270_v50 }
  0x8b   :  { %2464 = vmatprep.subr.bf16.mxu0 %v3016_v16 }
  0xdb   :  { %v246_v54 = vpop.xlane.xlu0 %245 }
  0xdc   :  { %v247_v55 = vsub.f32 %v3134_v3, %v246_v54  ;;  %v291_v3 = vmul.f32 %v3212_v63, %v277_v2 }
  0xde   :  { %v248_v56 = vmul.f32 1.442695, %v247_v55  ;;  %v292_v5 = vadd.f32 %v3218_v4, %v291_v3 }
  0xe0   :  { %2781 = vpow2.f32 %v248_v56 }
  0xea   :  { %v2782_v57 = vpop.eup %2781 }
  0xeb   :  { %250 = vadd.xlane.f32.xlu0 %v2782_v57 }
 0x140   :  { %v1732_v58 = vpop.f32.mrb[0].mxu0 }
 0x141   :  { %v1733_v60 = vpop.f32.mrb[1].mxu0 }
 0x142   :  { %v1734_v61 = vadd.f32 %v1733_v60, %v1732_v58 }
 0x144   :  { %v241_v62 = vadd.f32 %v1734_v61, %v3206_v59 }
 0x146   :  { %2783 = vtanh.f32 %v241_v62 }
 0x150   :  { %v2784_v6 = vpop.eup %2783 }
 0x151   :  { %357 = vmatprep.mubr.f32.mxu1 %v2784_v6 }
 0x152   :  { %358 = vmatmul.mubr.f32.vlgmr.msra.gmra.mrb[0].mxu1 %v292_v5 }
 0x153   :  { %2435 = vmatpush3.bf16.msra.mxu1 %v3139_v11 }
 0x154   :  { %2437 = vmatprep.subr.bf16.mxu1 %v3141_v12 }
 0x157   :  { %2439 = vmatpush3.bf16.msra.mxu1 %v3146_v17 }
 0x158   :  { %2441 = vmatprep.subr.bf16.mxu1 %v3150_v18 }
 0x15b   :  { %2443 = vmatpush3.bf16.msra.mxu1 %v3154_v23 }
 0x15c   :  { %2445 = vmatprep.subr.bf16.mxu1 %v3158_v24 }
 0x15f   :  { %2447 = vmatpush3.bf16.msra.mxu1 %v3162_v30 }
 0x160   :  { %2449 = vmatprep.subr.bf16.mxu1 %v3166_v31 }
 0x163   :  { %2451 = vmatpush3.bf16.msra.mxu1 %v3170_v36 }
 0x164   :  { %2453 = vmatprep.subr.bf16.mxu1 %v3174_v37 }
 0x167   :  { %2455 = vmatpush3.bf16.msra.mxu1 %v3178_v42 }
 0x168   :  { %2457 = vmatprep.subr.bf16.mxu1 %v3182_v43 }
 0x16b   :  { %2459 = vmatpush3.bf16.msra.mxu1 %v3186_v48 }
 0x16c   :  { %2461 = vmatprep.subr.bf16.mxu1 %v3190_v49 }
 0x16f   :  { %2463 = vmatpush3.bf16.msra.mxu1 %v3194_v52 }
 0x170   :  { %2489 = vmatprep.subr.bf16.mxu1 %v3137_v7 }
 0x178   :  { %v251_v8 = vpop.xlane.xlu0 %250 }
 0x179   :  { %2785 = vrcp.f32 %v251_v8 }
 0x183   :  { %v2786_v9 = vpop.eup %2785 }
 0x184   :  { %v3237_v10 = vmul.f32 %v2786_v9, %v2782_v57 }
 0x186   :  { %254 = vmax.xlane.f32.xlu1 %v3237_v10 }
 0x213   :  { %v255_v51 = vpop.xlane.xlu1 %254 }
 0x214   :  { %vm256_vm2 = vcmp.eq.f32.partialorder %v3237_v10, %v255_v51 }
 0x215   :  { %v257_v53 = vsel %vm256_vm2, %v3129_v1, 128 }
 0x216   :  { %v259_v54 = vshra.s32 %v257_v53, 16  ;;  %v258_v62 = vand.u32 65535, %v257_v53 }
 0x218   :  { %v261_v55 = vcvt.s32.f32 %v259_v54  ;;  %v260_v3 = vcvt.s32.f32 %v258_v62 }
 0x21a   :  { %262 = vmin.xlane.f32.xlu1 %v261_v55 }
 0x225   :  { %v1767_v56 = vpop.f32.mrb[0].mxu1 }
 0x226   :  { %v1768_v57 = vpop.f32.mrb[1].mxu1 }
 0x227   :  { %v1769_v58 = vadd.f32 %v1768_v57, %v1767_v56 }
 0x229   :  { %v360_v60 = vadd.f32 %v1769_v58, %v3206_v59 }
 0x22b   :  { %2787 = vtanh.f32 %v360_v60 }
 0x235   :  { %v2788_v61 = vpop.eup %2787 }
 0x236   :  { %2132 = vmatmul.mubr.f32.vlgmr.msra.gmra.mrb[2].mxu0 %v2788_v61  ;;  %551 = vmatprep.mubr.f32.mxu1 %v2788_v61 }
 0x237   :  { %2466 = vmatpush3.bf16.msra.mxu0 %v3241_v19  ;;  %2166 = vmatprep.mubr.msk.f32.mxu0 %vm3017_vm1, %v3018_v39 }
 0x238   :  { %2467 = vmatprep.subr.bf16.mxu0 %v3016_v16  ;;  %552 = vmatmul.mubr.f32.vlgmr.msra.gmra.mrb[2].mxu1 %v486_v47 }
 0x239   :  { %2491 = vmatpush3.bf16.msra.mxu1 %v3139_v11 }
 0x23a   :  { %2493 = vmatprep.subr.bf16.mxu1 %v3141_v12 }
 0x23b   :  { %2469 = vmatpush3.bf16.msra.mxu0 %v3244_v21 }
 0x23c   :  { %2470 = vmatprep.subr.bf16.mxu0 %v3016_v16 }
 0x23d   :  { %2495 = vmatpush3.bf16.msra.mxu1 %v3146_v17 }
 0x23e   :  { %2497 = vmatprep.subr.bf16.mxu1 %v3150_v18 }
 0x23f   :  { %2472 = vmatpush3.bf16.msra.mxu0 %v3248_v26 }
 0x240   :  { %2473 = vmatprep.subr.bf16.mxu0 %v3016_v16 }
 0x241   :  { %2499 = vmatpush3.bf16.msra.mxu1 %v3154_v23 }
 0x242   :  { %2501 = vmatprep.subr.bf16.mxu1 %v3158_v24 }
 0x243   :  { %2475 = vmatpush3.bf16.msra.mxu0 %v3252_v29 }
 0x244   :  { %2476 = vmatprep.subr.bf16.mxu0 %v3016_v16 }
 0x245   :  { %2503 = vmatpush3.bf16.msra.mxu1 %v3162_v30 }
 0x246   :  { %2505 = vmatprep.subr.bf16.mxu1 %v3166_v31 }
 0x247   :  { %2478 = vmatpush3.bf16.msra.mxu0 %v3257_v35 }
 0x248   :  { %2479 = vmatprep.subr.bf16.mxu0 %v3016_v16 }
 0x249   :  { %2507 = vmatpush3.bf16.msra.mxu1 %v3170_v36 }
 0x24a   :  { %2509 = vmatprep.subr.bf16.mxu1 %v3174_v37 }
 0x24b   :  { %2481 = vmatpush3.bf16.msra.mxu0 %v3262_v40 }
 0x24c   :  { %2482 = vmatprep.subr.bf16.mxu0 %v3016_v16 }
 0x24d   :  { %2511 = vmatpush3.bf16.msra.mxu1 %v3178_v42 }
 0x24e   :  { %2513 = vmatprep.subr.bf16.mxu1 %v3182_v43 }
 0x24f   :  { %2484 = vmatpush3.bf16.msra.mxu0 %v3266_v45 }
 0x250   :  { %2485 = vmatprep.subr.bf16.mxu0 %v3016_v16 }
 0x251   :  { %2515 = vmatpush3.bf16.msra.mxu1 %v3186_v48 }
 0x252   :  { %2517 = vmatprep.subr.bf16.mxu1 %v3190_v49 }
 0x253   :  { %2487 = vmatpush3.bf16.msra.mxu0 %v3270_v50 }
 0x254   :  { %2520 = vmatprep.subr.bf16.mxu0 %v3016_v16 }
 0x255   :  { %2519 = vmatpush3.bf16.msra.mxu1 %v3194_v52 }
 0x256   :  { %2545 = vmatprep.subr.bf16.mxu1 %v3137_v7 }
 0x2a7   :  { %v263_v2 = vpop.xlane.xlu1 %262 }
 0x2a8   :  { %vm264_vm3 = vcmp.eq.f32.partialorder %v261_v55, %v263_v2  ;;  %v269_v9 = vcvt.f32.s32 %v263_v2 }
 0x2a9   :  { %v265_v5 = vsel %vm264_vm3, %v260_v3, inf  ;;  %vm856_vm3 = vcmp.eq.s32.totalorder %v3129_v1, 3 }
 0x2aa   :  { %266 = vmin.xlane.f32.xlu0 %v265_v5  ;;  %v270_v14 = vshll.u32 %v269_v9, 16 }
 0x309   :  { %v430_v6 = vpop.f32.mrb[2].mxu0 }
 0x30a   :  { %v2133_v8 = vpop.f32.mrb[3].mxu0  ;;  %v431_v25 = vadd.f32 %v3301_v22, %v430_v6 }
 0x30b   :  { %v1819_v55 = vpop.f32.mrb[2].mxu1 }
 0x30c   :  { %v1820_v56 = vpop.f32.mrb[3].mxu1 }
 0x30d   :  { %v1821_v57 = vadd.f32 %v1820_v56, %v1819_v55 }
 0x30f   :  { %v554_v58 = vadd.f32 %v1821_v57, %v3206_v59 }
 0x337   :  { %v267_v13 = vpop.xlane.xlu0 %266 }
 0x338   :  { %v268_v15 = vcvt.f32.s32 %v267_v13 }
 0x33a   :  { %v3296_v20 = vadd.s32 %v270_v14, %v268_v15 }
 0x33c   :  { %vm273_vm4 = vcmp.eq.s32.totalorder %v3129_v1, %v3296_v20 }
 0x33d   :  { %v3307_v27 = vsel %vm273_vm4, 1.0, %v3018_v39 }
 0x33e   :  { %v434_v28 = vmax.f32 %v3307_v27, 0.0 }
 0x340   :  { %vm435_vm5 = vcmp.gt.f32.partialorder %v434_v28, 0.0 }
 0x341   :  { %v436_v32 = vsel %vm435_vm5, -inf, %v431_v25 }
 0x342   :  { %437 = vmax.xlane.f32.xlu1 %v436_v32 }
 0x3cf   :  { %v438_v33 = vpop.xlane.xlu1 %437 }
 0x3d0   :  { %v439_v34 = vsub.f32 %v436_v32, %v438_v33 }
 0x3d2   :  { %v440_v38 = vmul.f32 1.442695, %v439_v34  ;;  %v272_v34 = vcvt.s32.f32 %v3296_v20 }
 0x3d4   :  { %2789 = vpow2.f32 %v440_v38  ;;  %v276_v44 = vsel %vm95_vm0, %v272_v34, 0.0 }
 0x3de   :  { %v2790_v41 = vpop.eup %2789 }
 0x3df   :  { %442 = vadd.xlane.f32.xlu0 %v2790_v41 }
 0x46c   :  { %v443_v51 = vpop.xlane.xlu0 %442 }
 0x46d   :  { %2791 = vrcp.f32 %v443_v51 }
 0x46e   :  { %2793 = vtanh.f32 %v554_v58 }
 0x477   :  { %v2792_v53 = vpop.eup %2791 }
 0x478   :  { %v3330_v54 = vmul.f32 %v2792_v53, %v2790_v41  ;;  %v2794_v60 = vpop.eup %2793 }
 0x479   :  { %2167 = vmatmul.mubr.f32.vlgmr.msra.gmra.mrb[4].mxu0 %v2794_v60  ;;  %745 = vmatprep.mubr.f32.mxu1 %v2794_v60  ;;  %v3368_v60 = vld [vmem:[#allocation5 + $0x10] sm:$0xff] }
 0x47a   :  { %446 = vmax.xlane.f32.xlu1 %v3330_v54  ;;  %2522 = vmatpush3.bf16.msra.mxu0 %v3241_v19 }
 0x47b   :  { %2201 = vmatprep.mubr.msk.f32.mxu0 %vm3017_vm1, %v3018_v39  ;;  %2523 = vmatprep.subr.bf16.mxu0 %v3016_v16 }
 0x47e   :  { %2525 = vmatpush3.bf16.msra.mxu0 %v3244_v21 }
 0x47f   :  { %2526 = vmatprep.subr.bf16.mxu0 %v3016_v16 }
 0x482   :  { %2528 = vmatpush3.bf16.msra.mxu0 %v3248_v26 }
 0x483   :  { %2529 = vmatprep.subr.bf16.mxu0 %v3016_v16 }
 0x486   :  { %2531 = vmatpush3.bf16.msra.mxu0 %v3252_v29 }
 0x487   :  { %2532 = vmatprep.subr.bf16.mxu0 %v3016_v16 }
 0x48a   :  { %2534 = vmatpush3.bf16.msra.mxu0 %v3257_v35 }
 0x48b   :  { %2535 = vmatprep.subr.bf16.mxu0 %v3016_v16 }
 0x48e   :  { %2537 = vmatpush3.bf16.msra.mxu0 %v3262_v40 }
 0x48f   :  { %2538 = vmatprep.subr.bf16.mxu0 %v3016_v16 }
 0x492   :  { %2540 = vmatpush3.bf16.msra.mxu0 %v3266_v45 }
 0x493   :  { %2541 = vmatprep.subr.bf16.mxu0 %v3016_v16 }
 0x496   :  { %2543 = vmatpush3.bf16.msra.mxu0 %v3270_v50 }
 0x497   :  { %2576 = vmatprep.subr.bf16.mxu0 %v3016_v16 }
 0x507   :  { %v447_v61 = vpop.xlane.xlu1 %446 }
 0x508   :  { %vm448_vm6 = vcmp.eq.f32.partialorder %v3330_v54, %v447_v61  ;;  %v679_v61 = vmul.f32 %v3212_v63, %v3368_v60 }
 0x509   :  { %v449_v62 = vsel %vm448_vm6, %v3129_v1, 128 }
 0x50a   :  { %v451_v2 = vshra.s32 %v449_v62, 16  ;;  %v450_v5 = vand.u32 65535, %v449_v62  ;;  %v680_v62 = vadd.f32 %v3218_v4, %v679_v61 }
 0x50c   :  { %v453_v3 = vcvt.s32.f32 %v451_v2  ;;  %v452_v8 = vcvt.s32.f32 %v450_v5  ;;  %746 = vmatmul.mubr.f32.vlgmr.msra.gmra.mrb[4].mxu1 %v680_v62 }
 0x50d   :  { %2547 = vmatpush3.bf16.msra.mxu1 %v3139_v11 }
 0x50e   :  { %454 = vmin.xlane.f32.xlu0 %v453_v3  ;;  %2549 = vmatprep.subr.bf16.mxu1 %v3141_v12 }
 0x511   :  { %2551 = vmatpush3.bf16.msra.mxu1 %v3146_v17 }
 0x512   :  { %2553 = vmatprep.subr.bf16.mxu1 %v3150_v18 }
 0x515   :  { %2555 = vmatpush3.bf16.msra.mxu1 %v3154_v23 }
 0x516   :  { %2557 = vmatprep.subr.bf16.mxu1 %v3158_v24 }
 0x519   :  { %2559 = vmatpush3.bf16.msra.mxu1 %v3162_v30 }
 0x51a   :  { %2561 = vmatprep.subr.bf16.mxu1 %v3166_v31 }
 0x51d   :  { %2563 = vmatpush3.bf16.msra.mxu1 %v3170_v36 }
 0x51e   :  { %2565 = vmatprep.subr.bf16.mxu1 %v3174_v37 }
 0x521   :  { %2567 = vmatpush3.bf16.msra.mxu1 %v3178_v42 }
 0x522   :  { %2569 = vmatprep.subr.bf16.mxu1 %v3182_v43 }
 0x525   :  { %2571 = vmatpush3.bf16.msra.mxu1 %v3186_v48 }
 0x526   :  { %2573 = vmatprep.subr.bf16.mxu1 %v3190_v49 }
 0x529   :  { %2575 = vmatpush3.bf16.msra.mxu1 %v3194_v52 }
 0x52a   :  { %2601 = vmatprep.subr.bf16.mxu1 %v3137_v7 }
 0x54c   :  { %v624_v13 = vpop.f32.mrb[4].mxu0 }
 0x54d   :  { %v2168_v14 = vpop.f32.mrb[5].mxu0  ;;  %v625_v46 = vadd.f32 %v3301_v22, %v624_v13 }
 0x59b   :  { %v455_v6 = vpop.xlane.xlu0 %454 }
 0x59c   :  { %vm456_vm7 = vcmp.eq.f32.partialorder %v453_v3, %v455_v6  ;;  %v461_v15 = vcvt.f32.s32 %v455_v6 }
 0x59d   :  { %v457_v9 = vsel %vm456_vm7, %v452_v8, inf }
 0x59e   :  { %458 = vmin.xlane.f32.xlu1 %v457_v9  ;;  %v462_v32 = vshll.u32 %v461_v15, 16 }
 0x5df   :  { %v1871_v3 = vpop.f32.mrb[4].mxu1 }
 0x5e0   :  { %v1872_v5 = vpop.f32.mrb[5].mxu1 }
 0x5e1   :  { %v1873_v6 = vadd.f32 %v1872_v5, %v1871_v3 }
 0x5e3   :  { %v748_v8 = vadd.f32 %v1873_v6, %v3206_v59 }
 0x62b   :  { %v459_v25 = vpop.xlane.xlu1 %458 }
 0x62c   :  { %v460_v33 = vcvt.f32.s32 %v459_v25 }
 0x62e   :  { %v463_v38 = vadd.s32 %v462_v32, %v460_v33 }
 0x630   :  { %v464_v41 = vcvt.s32.f32 %v463_v38  ;;  %vm465_vm9 = vcmp.eq.s32.totalorder %v3129_v1, %v463_v38 }
 0x631   :  { %v1694_v47 = vsel %vm465_vm9, 1.0, %v3018_v39 }
 0x632   :  { %v3361_v51 = vsel %vm468_vm8, %v464_v41, %v276_v44  ;;  %v3365_v53 = vmax.f32 %v434_v28, %v1694_v47  ;;  %vm1050_vm8 = vcmp.eq.s32.totalorder %v3129_v1, 4 }
 0x634   :  { %vm629_vm10 = vcmp.gt.f32.partialorder %v3365_v53, 0.0 }
 0x635   :  { %v630_v20 = vsel %vm629_vm10, -inf, %v625_v46 }
 0x636   :  { %631 = vmax.xlane.f32.xlu0 %v630_v20 }
 0x6c3   :  { %v632_v55 = vpop.xlane.xlu0 %631 }
 0x6c4   :  { %v633_v56 = vsub.f32 %v630_v20, %v632_v55 }
 0x6c6   :  { %v634_v57 = vmul.f32 1.442695, %v633_v56 }
 0x6c8   :  { %2795 = vpow2.f32 %v634_v57 }
 0x6d2   :  { %v2796_v58 = vpop.eup %2795 }
 0x6d3   :  { %636 = vadd.xlane.f32.xlu1 %v2796_v58 }
 0x760   :  { %v637_v27 = vpop.xlane.xlu1 %636 }
 0x761   :  { %2797 = vrcp.f32 %v637_v27 }
 0x762   :  { %2799 = vtanh.f32 %v748_v8 }
 0x76b   :  { %v2798_v28 = vpop.eup %2797 }
 0x76c   :  { %v3389_v2 = vmul.f32 %v2798_v28, %v2796_v58  ;;  %v2800_v9 = vpop.eup %2799 }
 0x76d   :  { %2202 = vmatmul.mubr.f32.vlgmr.msra.gmra.mrb[6].mxu0 %v2800_v9  ;;  %939 = vmatprep.mubr.f32.mxu1 %v2800_v9  ;;  %v3424_v9 = vld [vmem:[#allocation5 + $0x18] sm:$0xff] }
 0x76e   :  { %640 = vmax.xlane.f32.xlu0 %v3389_v2  ;;  %2578 = vmatpush3.bf16.msra.mxu0 %v3241_v19 }
 0x76f   :  { %2236 = vmatprep.mubr.msk.f32.mxu0 %vm3017_vm1, %v3018_v39  ;;  %2579 = vmatprep.subr.bf16.mxu0 %v3016_v16 }
 0x772   :  { %2581 = vmatpush3.bf16.msra.mxu0 %v3244_v21 }
 0x773   :  { %2582 = vmatprep.subr.bf16.mxu0 %v3016_v16 }
 0x776   :  { %2584 = vmatpush3.bf16.msra.mxu0 %v3248_v26 }
 0x777   :  { %2585 = vmatprep.subr.bf16.mxu0 %v3016_v16 }
 0x77a   :  { %2587 = vmatpush3.bf16.msra.mxu0 %v3252_v29 }
 0x77b   :  { %2588 = vmatprep.subr.bf16.mxu0 %v3016_v16 }
 0x77e   :  { %2590 = vmatpush3.bf16.msra.mxu0 %v3257_v35 }
 0x77f   :  { %2591 = vmatprep.subr.bf16.mxu0 %v3016_v16 }
 0x782   :  { %2593 = vmatpush3.bf16.msra.mxu0 %v3262_v40 }
 0x783   :  { %2594 = vmatprep.subr.bf16.mxu0 %v3016_v16 }
 0x786   :  { %2596 = vmatpush3.bf16.msra.mxu0 %v3266_v45 }
 0x787   :  { %2597 = vmatprep.subr.bf16.mxu0 %v3016_v16 }
 0x78a   :  { %2599 = vmatpush3.bf16.msra.mxu0 %v3270_v50 }
 0x78b   :  { %2632 = vmatprep.subr.bf16.mxu0 %v3016_v16 }
 0x7fb   :  { %v641_v13 = vpop.xlane.xlu0 %640 }
 0x7fc   :  { %vm642_vm11 = vcmp.eq.f32.partialorder %v3389_v2, %v641_v13  ;;  %v873_v13 = vmul.f32 %v3212_v63, %v3424_v9 }
 0x7fd   :  { %v643_v14 = vsel %vm642_vm11, %v3129_v1, 128 }
 0x7fe   :  { %v645_v15 = vshra.s32 %v643_v14, 16  ;;  %v644_v32 = vand.u32 65535, %v643_v14 }
 0x800   :  { %v647_v25 = vcvt.s32.f32 %v645_v15  ;;  %v646_v34 = vcvt.s32.f32 %v644_v32 }
 0x802   :  { %648 = vmin.xlane.f32.xlu1 %v647_v25 }
 0x840   :  { %v818_v41 = vpop.f32.mrb[6].mxu0 }
 0x841   :  { %v2203_v44 = vpop.f32.mrb[7].mxu0  ;;  %v819_v58 = vadd.f32 %v3301_v22, %v818_v41 }
 0x88f   :  { %v649_v33 = vpop.xlane.xlu1 %648 }
 0x890   :  { %vm650_vm12 = vcmp.eq.f32.partialorder %v647_v25, %v649_v33  ;;  %v655_v46 = vcvt.f32.s32 %v649_v33 }
 0x891   :  { %v651_v38 = vsel %vm650_vm12, %v646_v34, inf  ;;  %vm1244_vm12 = vcmp.eq.s32.totalorder %v3129_v1, 5 }
 0x892   :  { %652 = vmin.xlane.f32.xlu0 %v651_v38  ;;  %v656_v20 = vshll.u32 %v655_v46, 16 }
 0x91f   :  { %v653_v47 = vpop.xlane.xlu0 %652 }
 0x920   :  { %v654_v55 = vcvt.f32.s32 %v653_v47 }
 0x922   :  { %v657_v56 = vadd.s32 %v656_v20, %v654_v55 }
 0x924   :  { %v658_v57 = vcvt.s32.f32 %v657_v56  ;;  %vm659_vm14 = vcmp.eq.s32.totalorder %v3129_v1, %v657_v56 }
 0x925   :  { %v1695_v61 = vsel %vm659_vm14, 1.0, %v3018_v39 }
 0x926   :  { %v3418_v62 = vsel %vm662_vm13, %v658_v57, %v3361_v51  ;;  %v3421_v27 = vmax.f32 %v3365_v53, %v1695_v61  ;;  %v874_v51 = vadd.f32 %v3218_v4, %v873_v13 }
 0x928   :  { %vm823_vm15 = vcmp.gt.f32.partialorder %v3421_v27, 0.0  ;;  %940 = vmatmul.mubr.f32.vlgmr.msra.gmra.mrb[6].mxu1 %v874_v51 }
 0x929   :  { %v824_v28 = vsel %vm823_vm15, -inf, %v819_v58  ;;  %2603 = vmatpush3.bf16.msra.mxu1 %v3139_v11 }
 0x92a   :  { %825 = vmax.xlane.f32.xlu1 %v824_v28  ;;  %2605 = vmatprep.subr.bf16.mxu1 %v3141_v12 }
 0x92d   :  { %2607 = vmatpush3.bf16.msra.mxu1 %v3146_v17 }
 0x92e   :  { %2609 = vmatprep.subr.bf16.mxu1 %v3150_v18 }
 0x931   :  { %2611 = vmatpush3.bf16.msra.mxu1 %v3154_v23 }
 0x932   :  { %2613 = vmatprep.subr.bf16.mxu1 %v3158_v24 }
 0x935   :  { %2615 = vmatpush3.bf16.msra.mxu1 %v3162_v30 }
 0x936   :  { %2617 = vmatprep.subr.bf16.mxu1 %v3166_v31 }
 0x939   :  { %2619 = vmatpush3.bf16.msra.mxu1 %v3170_v36 }
 0x93a   :  { %2621 = vmatprep.subr.bf16.mxu1 %v3174_v37 }
 0x93d   :  { %2623 = vmatpush3.bf16.msra.mxu1 %v3178_v42 }
 0x93e   :  { %2625 = vmatprep.subr.bf16.mxu1 %v3182_v43 }
 0x941   :  { %2627 = vmatpush3.bf16.msra.mxu1 %v3186_v48 }
 0x942   :  { %2629 = vmatprep.subr.bf16.mxu1 %v3190_v49 }
 0x945   :  { %2631 = vmatpush3.bf16.msra.mxu1 %v3194_v52 }
 0x946   :  { %2657 = vmatprep.subr.bf16.mxu1 %v3137_v7 }
 0x9b7   :  { %v826_v3 = vpop.xlane.xlu1 %825 }
 0x9b8   :  { %v827_v5 = vsub.f32 %v824_v28, %v826_v3 }
 0x9ba   :  { %v828_v6 = vmul.f32 1.442695, %v827_v5 }
 0x9bc   :  { %2801 = vpow2.f32 %v828_v6 }
 0x9c6   :  { %v2802_v8 = vpop.eup %2801 }
 0x9c7   :  { %830 = vadd.xlane.f32.xlu0 %v2802_v8 }
 0x9fb   :  { %v1923_v25 = vpop.f32.mrb[6].mxu1 }
 0x9fc   :  { %v1924_v32 = vpop.f32.mrb[7].mxu1 }
 0x9fd   :  { %v1925_v33 = vadd.f32 %v1924_v32, %v1923_v25 }
 0x9ff   :  { %v942_v34 = vadd.f32 %v1925_v33, %v3206_v59 }
 0xa54   :  { %v831_v53 = vpop.xlane.xlu0 %830 }
 0xa55   :  { %2803 = vrcp.f32 %v831_v53 }
 0xa56   :  { %2805 = vtanh.f32 %v942_v34 }
 0xa5f   :  { %v2804_v14 = vpop.eup %2803 }
 0xa60   :  { %v3445_v15 = vmul.f32 %v2804_v14, %v2802_v8  ;;  %v2806_v38 = vpop.eup %2805 }
 0xa61   :  { %2237 = vmatmul.mubr.f32.vlgmr.msra.gmra.mrb[8].mxu0 %v2806_v38  ;;  %1133 = vmatprep.mubr.f32.mxu1 %v2806_v38 }
 0xa62   :  { %834 = vmax.xlane.f32.xlu1 %v3445_v15  ;;  %2634 = vmatpush3.bf16.msra.mxu0 %v3241_v19 }
 0xa63   :  { %2271 = vmatprep.mubr.msk.f32.mxu0 %vm3017_vm1, %v3018_v39  ;;  %2635 = vmatprep.subr.bf16.mxu0 %v3016_v16 }
 0xa66   :  { %2637 = vmatpush3.bf16.msra.mxu0 %v3244_v21 }
 0xa67   :  { %2638 = vmatprep.subr.bf16.mxu0 %v3016_v16 }
 0xa6a   :  { %2640 = vmatpush3.bf16.msra.mxu0 %v3248_v26 }
 0xa6b   :  { %2641 = vmatprep.subr.bf16.mxu0 %v3016_v16 }
 0xa6e   :  { %2643 = vmatpush3.bf16.msra.mxu0 %v3252_v29 }
 0xa6f   :  { %2644 = vmatprep.subr.bf16.mxu0 %v3016_v16 }
 0xa72   :  { %2646 = vmatpush3.bf16.msra.mxu0 %v3257_v35 }
 0xa73   :  { %2647 = vmatprep.subr.bf16.mxu0 %v3016_v16 }
 0xa76   :  { %2649 = vmatpush3.bf16.msra.mxu0 %v3262_v40 }
 0xa77   :  { %2650 = vmatprep.subr.bf16.mxu0 %v3016_v16 }
 0xa7a   :  { %2652 = vmatpush3.bf16.msra.mxu0 %v3266_v45 }
 0xa7b   :  { %2653 = vmatprep.subr.bf16.mxu0 %v3016_v16 }
 0xa7e   :  { %2655 = vmatpush3.bf16.msra.mxu0 %v3270_v50 }
 0xa7f   :  { %2688 = vmatprep.subr.bf16.mxu0 %v3016_v16 }
 0xaef   :  { %v835_v41 = vpop.xlane.xlu1 %834 }
 0xaf0   :  { %vm836_vm0 = vcmp.eq.f32.partialorder %v3445_v15, %v835_v41 }
 0xaf1   :  { %v837_v44 = vsel %vm836_vm0, %v3129_v1, 128 }
 0xaf2   :  { %v839_v46 = vshra.s32 %v837_v44, 16  ;;  %v838_v20 = vand.u32 65535, %v837_v44  ;;  %v3480_v44 = vld [vmem:[#allocation5 + $0x20] sm:$0xff] }
 0xaf4   :  { %v841_v47 = vcvt.s32.f32 %v839_v46  ;;  %v840_v56 = vcvt.s32.f32 %v838_v20  ;;  %v1067_v46 = vmul.f32 %v3212_v63, %v3480_v44 }
 0xaf6   :  { %842 = vmin.xlane.f32.xlu0 %v841_v47 }
 0xb34   :  { %v1012_v58 = vpop.f32.mrb[8].mxu0 }
 0xb35   :  { %v2238_v61 = vpop.f32.mrb[9].mxu0  ;;  %v1013_v51 = vadd.f32 %v3301_v22, %v1012_v58 }
 0xb83   :  { %v843_v55 = vpop.xlane.xlu0 %842 }
 0xb84   :  { %vm844_vm2 = vcmp.eq.f32.partialorder %v841_v47, %v843_v55  ;;  %v849_v28 = vcvt.f32.s32 %v843_v55 }
 0xb85   :  { %v845_v57 = vsel %vm844_vm2, %v840_v56, inf  ;;  %vm1438_vm2 = vcmp.eq.s32.totalorder %v3129_v1, 6 }
 0xb86   :  { %846 = vmin.xlane.f32.xlu1 %v845_v57  ;;  %v850_v5 = vshll.u32 %v849_v28, 16 }
 0xc13   :  { %v847_v3 = vpop.xlane.xlu1 %846 }
 0xc14   :  { %v848_v6 = vcvt.f32.s32 %v847_v3 }
 0xc16   :  { %v851_v8 = vadd.s32 %v850_v5, %v848_v6 }
 0xc18   :  { %v852_v13 = vcvt.s32.f32 %v851_v8  ;;  %vm853_vm4 = vcmp.eq.s32.totalorder %v3129_v1, %v851_v8 }
 0xc19   :  { %v1696_v53 = vsel %vm853_vm4, 1.0, %v3018_v39 }
 0xc1a   :  { %v3474_v14 = vsel %vm856_vm3, %v852_v13, %v3418_v62  ;;  %v3477_v25 = vmax.f32 %v3421_v27, %v1696_v53  ;;  %v1068_v62 = vadd.f32 %v3218_v4, %v1067_v46 }
 0xc1c   :  { %vm1017_vm5 = vcmp.gt.f32.partialorder %v3477_v25, 0.0  ;;  %1134 = vmatmul.mubr.f32.vlgmr.msra.gmra.mrb[8].mxu1 %v1068_v62 }
 0xc1d   :  { %v1018_v32 = vsel %vm1017_vm5, -inf, %v1013_v51  ;;  %2659 = vmatpush3.bf16.msra.mxu1 %v3139_v11  ;;  %vm91_vm5 = vcmp.lt.s32.totalorder %v3129_v1, 8 }
 0xc1e   :  { %1019 = vmax.xlane.f32.xlu0 %v1018_v32  ;;  %2661 = vmatprep.subr.bf16.mxu1 %v3141_v12 }
 0xc21   :  { %2663 = vmatpush3.bf16.msra.mxu1 %v3146_v17 }
 0xc22   :  { %2665 = vmatprep.subr.bf16.mxu1 %v3150_v18 }
 0xc25   :  { %2667 = vmatpush3.bf16.msra.mxu1 %v3154_v23 }
 0xc26   :  { %2669 = vmatprep.subr.bf16.mxu1 %v3158_v24 }
 0xc29   :  { %2671 = vmatpush3.bf16.msra.mxu1 %v3162_v30 }
 0xc2a   :  { %2673 = vmatprep.subr.bf16.mxu1 %v3166_v31 }
 0xc2d   :  { %2675 = vmatpush3.bf16.msra.mxu1 %v3170_v36 }
 0xc2e   :  { %2677 = vmatprep.subr.bf16.mxu1 %v3174_v37 }
 0xc31   :  { %2679 = vmatpush3.bf16.msra.mxu1 %v3178_v42 }
 0xc32   :  { %2681 = vmatprep.subr.bf16.mxu1 %v3182_v43 }
 0xc35   :  { %2683 = vmatpush3.bf16.msra.mxu1 %v3186_v48 }
 0xc36   :  { %2685 = vmatprep.subr.bf16.mxu1 %v3190_v49 }
 0xc39   :  { %2687 = vmatpush3.bf16.msra.mxu1 %v3194_v52 }
 0xc3a   :  { %2713 = vmatprep.subr.bf16.mxu1 %v3137_v7 }
 0xcab   :  { %v1020_v33 = vpop.xlane.xlu0 %1019 }
 0xcac   :  { %v1021_v34 = vsub.f32 %v1018_v32, %v1020_v33 }
 0xcae   :  { %v1022_v38 = vmul.f32 1.442695, %v1021_v34 }
 0xcb0   :  { %2807 = vpow2.f32 %v1022_v38 }
 0xcba   :  { %v2808_v41 = vpop.eup %2807 }
 0xcbb   :  { %1024 = vadd.xlane.f32.xlu1 %v2808_v41 }
 0xcef   :  { %v1975_v55 = vpop.f32.mrb[8].mxu1 }
 0xcf0   :  { %v1976_v56 = vpop.f32.mrb[9].mxu1 }
 0xcf1   :  { %v1977_v57 = vadd.f32 %v1976_v56, %v1975_v55 }
 0xcf3   :  { %v1136_v58 = vadd.f32 %v1977_v57, %v3206_v59 }
 0xd48   :  { %v1025_v27 = vpop.xlane.xlu1 %1024 }
 0xd49   :  { %2809 = vrcp.f32 %v1025_v27 }
 0xd4a   :  { %2811 = vtanh.f32 %v1136_v58 }
 0xd53   :  { %v2810_v47 = vpop.eup %2809 }
 0xd54   :  { %v3501_v20 = vmul.f32 %v2810_v47, %v2808_v41  ;;  %v2812_v61 = vpop.eup %2811 }
 0xd55   :  { %2272 = vmatmul.mubr.f32.vlgmr.msra.gmra.mrb[10].mxu0 %v2812_v61  ;;  %1327 = vmatprep.mubr.f32.mxu1 %v2812_v61 }
 0xd56   :  { %1028 = vmax.xlane.f32.xlu0 %v3501_v20  ;;  %2690 = vmatpush3.bf16.msra.mxu0 %v3241_v19 }
 0xd57   :  { %2306 = vmatprep.mubr.msk.f32.mxu0 %vm3017_vm1, %v3018_v39  ;;  %2691 = vmatprep.subr.bf16.mxu0 %v3016_v16 }
 0xd5a   :  { %2693 = vmatpush3.bf16.msra.mxu0 %v3244_v21 }
 0xd5b   :  { %2694 = vmatprep.subr.bf16.mxu0 %v3016_v16 }
 0xd5e   :  { %2696 = vmatpush3.bf16.msra.mxu0 %v3248_v26 }
 0xd5f   :  { %2697 = vmatprep.subr.bf16.mxu0 %v3016_v16 }
 0xd62   :  { %2699 = vmatpush3.bf16.msra.mxu0 %v3252_v29 }
 0xd63   :  { %2700 = vmatprep.subr.bf16.mxu0 %v3016_v16 }
 0xd66   :  { %2702 = vmatpush3.bf16.msra.mxu0 %v3257_v35 }
 0xd67   :  { %2703 = vmatprep.subr.bf16.mxu0 %v3016_v16 }
 0xd6a   :  { %2705 = vmatpush3.bf16.msra.mxu0 %v3262_v40 }
 0xd6b   :  { %2706 = vmatprep.subr.bf16.mxu0 %v3016_v16 }
 0xd6e   :  { %2708 = vmatpush3.bf16.msra.mxu0 %v3266_v45 }
 0xd6f   :  { %2709 = vmatprep.subr.bf16.mxu0 %v3016_v16 }
 0xd72   :  { %2711 = vmatpush3.bf16.msra.mxu0 %v3270_v50 }
 0xd73   :  { %2744 = vmatprep.subr.bf16.mxu0 %v3016_v16 }
 0xde3   :  { %v1029_v7 = vpop.xlane.xlu0 %1028 }
 0xde4   :  { %vm1030_vm6 = vcmp.eq.f32.partialorder %v3501_v20, %v1029_v7 }
 0xde5   :  { %v1031_v28 = vsel %vm1030_vm6, %v3129_v1, 128 }
 0xde6   :  { %v1033_v3 = vshra.s32 %v1031_v28, 16  ;;  %v1032_v6 = vand.u32 65535, %v1031_v28 }
 0xde8   :  { %v1035_v5 = vcvt.s32.f32 %v1033_v3  ;;  %v1034_v13 = vcvt.s32.f32 %v1032_v6  ;;  %v3536_v3 = vld [vmem:[#allocation5 + $0x28] sm:$0xff] }
 0xdea   :  { %1036 = vmin.xlane.f32.xlu1 %v1035_v5 }
 0xe28   :  { %v1206_v53 = vpop.f32.mrb[10].mxu0 }
 0xe29   :  { %v2273_v32 = vpop.f32.mrb[11].mxu0  ;;  %v1207_v27 = vadd.f32 %v3301_v22, %v1206_v53 }
 0xe2a   :  { %v3585_v32 = vld [vmem:[#allocation5 + $0x30] sm:$0xff] }
 0xe77   :  { %v1037_v8 = vpop.xlane.xlu1 %1036 }
 0xe78   :  { %vm1038_vm7 = vcmp.eq.f32.partialorder %v1035_v5, %v1037_v8  ;;  %v1043_v33 = vcvt.f32.s32 %v1037_v8  ;;  %v1261_v5 = vmul.f32 %v3212_v63, %v3536_v3 }
 0xe79   :  { %v1039_v51 = vsel %vm1038_vm7, %v1034_v13, inf }
 0xe7a   :  { %1040 = vmin.xlane.f32.xlu0 %v1039_v51  ;;  %v1044_v38 = vshll.u32 %v1043_v33, 16  ;;  %v2861_v33 = vld [vmem:[%s3690_s6] ss:$0 sm:$0xff] }
 0xf07   :  { %v1041_v34 = vpop.xlane.xlu0 %1040 }
 0xf08   :  { %v1042_v41 = vcvt.f32.s32 %v1041_v34  ;;  %v1455_v34 = vmul.f32 %v2861_v33, %v3585_v32 }
 0xf0a   :  { %v1045_v46 = vadd.s32 %v1044_v38, %v1042_v41  ;;  %v2862_v38 = vld [vmem:[%s3691_s7] ss:$0 sm:$0xff] }
 0xf0b   :  { %v1456_v41 = vadd.f32 %v2862_v38, %v1455_v34  ;;  %v88_v38 = vcvt.s32.f32 %v3129_v1 }
 0xf0c   :  { %v1046_v62 = vcvt.s32.f32 %v1045_v46  ;;  %vm1047_vm9 = vcmp.eq.s32.totalorder %v3129_v1, %v1045_v46 }
 0xf0d   :  { %v1697_v47 = vsel %vm1047_vm9, 1.0, %v3018_v39  ;;  %vm673_vm7 = vcmp.eq.f32.partialorder %v88_v38, %v3368_v60  ;;  %vm1449_vm9 = vcmp.eq.f32.partialorder %v88_v38, %v3585_v32 }
 0xf0e   :  { %v3530_v55 = vsel %vm1050_vm8, %v1046_v62, %v3474_v14  ;;  %v3533_v56 = vmax.f32 %v3477_v25, %v1697_v47  ;;  %v1262_v14 = vadd.f32 %v3218_v4, %v1261_v5  ;;  %vm1061_vm8 = vcmp.eq.f32.partialorder %v88_v38, %v3480_v44 }
 0xf10   :  { %vm1211_vm10 = vcmp.gt.f32.partialorder %v3533_v56, 0.0  ;;  %1328 = vmatmul.mubr.f32.vlgmr.msra.gmra.mrb[10].mxu1 %v1262_v14 }
 0xf11   :  { %v1212_v57 = vsel %vm1211_vm10, -inf, %v1207_v27  ;;  %2715 = vmatpush3.bf16.msra.mxu1 %v3139_v11 }
 0xf12   :  { %1213 = vmax.xlane.f32.xlu1 %v1212_v57  ;;  %2717 = vmatprep.subr.bf16.mxu1 %v3141_v12 }
 0xf15   :  { %2719 = vmatpush3.bf16.msra.mxu1 %v3146_v17 }
 0xf16   :  { %2721 = vmatprep.subr.bf16.mxu1 %v3150_v18 }
 0xf19   :  { %2723 = vmatpush3.bf16.msra.mxu1 %v3154_v23 }
 0xf1a   :  { %2725 = vmatprep.subr.bf16.mxu1 %v3158_v24 }
 0xf1d   :  { %2727 = vmatpush3.bf16.msra.mxu1 %v3162_v30 }
 0xf1e   :  { %2729 = vmatprep.subr.bf16.mxu1 %v3166_v31 }
 0xf21   :  { %2731 = vmatpush3.bf16.msra.mxu1 %v3170_v36 }
 0xf22   :  { %2733 = vmatprep.subr.bf16.mxu1 %v3174_v37 }
 0xf25   :  { %2735 = vmatpush3.bf16.msra.mxu1 %v3178_v42 }
 0xf26   :  { %2737 = vmatprep.subr.bf16.mxu1 %v3182_v43 }
 0xf29   :  { %2739 = vmatpush3.bf16.msra.mxu1 %v3186_v48 }
 0xf2a   :  { %2741 = vmatprep.subr.bf16.mxu1 %v3190_v49 }
 0xf2d   :  { %2743 = vmatpush3.bf16.msra.mxu1 %v3194_v52 }
 0xf9f   :  { %v1214_v58 = vpop.xlane.xlu1 %1213 }
 0xfa0   :  { %v1215_v61 = vsub.f32 %v1212_v57, %v1214_v58  ;;  %v2863_v57 = vld [vmem:[%s3687_s3] ss:$0 sm:$0xff]  ;;  %s3019_s3 = smov [#allocation10]  }
 0xfa1   :  { %s1663_s7 = sshll.u32 %s3019_s3, 4  ;;  %s1664_s7 = int_to_ptr.vmem [resolvable:$true] %s1663_s7 }
 0xfa2   :  { %v1216_v7 = vmul.f32 1.442695, %v1215_v61  ;;  %s2954_s24 = scalar_lea.vmem %s1664_s7, 16  ;;  %s2958_s27 = scalar_lea.vmem %s1664_s7, 32 }
 0xfa3   :  { %p2955_p4 = scmp.ne.s32.totalorder %s1664_s7, %s2954_s24  ;;  %p2959_p5 = scmp.lt.s32.totalorder %s1664_s7, %s1664_s7 }
 0xfa4   :  { %2813 = vpow2.f32 %v1216_v7  ;;  %p2960_p6 = scmp.lt.s32.totalorder %s2958_s27, %s2954_s24 }
 0xfa6   :  { %p2961_p7 = por %p2960_p6, %p2959_p5 }
 0xfa8   :  { %p2962_p8 = pnand %p2961_p7, %p2955_p4 }
 0xfae   :  { %v2814_v28 = vpop.eup %2813 }
 0xfaf   :  { %1218 = vadd.xlane.f32.xlu0 %v2814_v28 }
 0xfe3   :  { %v2027_v18 = vpop.f32.mrb[10].mxu1 }
 0xfe4   :  { %v2028_v23 = vpop.f32.mrb[11].mxu1 }
 0xfe5   :  { %v2029_v24 = vadd.f32 %v2028_v23, %v2027_v18 }
 0xfe7   :  { %v1330_v30 = vadd.f32 %v2029_v24, %v3206_v59 }
0x103c   :  { %v1219_v11 = vpop.xlane.xlu0 %1218 }
0x103d   :  { %2815 = vrcp.f32 %v1219_v11 }
0x103e   :  { %2817 = vtanh.f32 %v1330_v30 }
0x1047   :  { %v2816_v12 = vpop.eup %2815 }
0x1048   :  { %v3556_v17 = vmul.f32 %v2816_v12, %v2814_v28  ;;  %v2818_v31 = vpop.eup %2817 }
0x1049   :  { %2307 = vmatmul.mubr.f32.vlgmr.msra.gmra.mrb[12].mxu0 %v2818_v31  ;;  %1521 = vmatprep.mubr.f32.mxu1 %v2818_v31 }
0x104a   :  { %1222 = vmax.xlane.f32.xlu1 %v3556_v17  ;;  %2746 = vmatpush3.bf16.msra.mxu0 %v3241_v19  ;;  %v1248_v60 = vmul.f32 1.442695, %v3556_v17 }
0x104b   :  { %2341 = vmatprep.mubr.msk.f32.mxu0 %vm3017_vm1, %v3018_v39  ;;  %2747 = vmatprep.subr.bf16.mxu0 %v3016_v16 }
0x104c   :  { %1522 = vmatmul.mubr.f32.vlgmr.msra.gmra.mrb[12].mxu1 %v1456_v41 }
0x104e   :  { %2749 = vmatpush3.bf16.msra.mxu0 %v3244_v21 }
0x104f   :  { %2750 = vmatprep.subr.bf16.mxu0 %v3016_v16 }
0x1052   :  { %2752 = vmatpush3.bf16.msra.mxu0 %v3248_v26 }
0x1053   :  { %2753 = vmatprep.subr.bf16.mxu0 %v3016_v16 }
0x1056   :  { %2755 = vmatpush3.bf16.msra.mxu0 %v3252_v29 }
0x1057   :  { %2756 = vmatprep.subr.bf16.mxu0 %v3016_v16 }
0x105a   :  { %2758 = vmatpush3.bf16.msra.mxu0 %v3257_v35 }
0x105b   :  { %2759 = vmatprep.subr.bf16.mxu0 %v3016_v16 }
0x105e   :  { %2761 = vmatpush3.bf16.msra.mxu0 %v3262_v40 }
0x105f   :  { %2762 = vmatprep.subr.bf16.mxu0 %v3016_v16 }
0x1062   :  { %2764 = vmatpush3.bf16.msra.mxu0 %v3266_v45 }
0x1063   :  { %2765 = vmatprep.subr.bf16.mxu0 %v3016_v16 }
0x1066   :  { %2767 = vmatpush3.bf16.msra.mxu0 %v3270_v50 }
0x10d7   :  { %v1223_v36 = vpop.xlane.xlu1 %1222 }
0x10d8   :  { %vm1224_vm1 = vcmp.eq.f32.partialorder %v3556_v17, %v1223_v36 }
0x10d9   :  { %v1225_v37 = vsel %vm1224_vm1, %v3129_v1, 128 }
0x10da   :  { %v1227_v42 = vshra.s32 %v1225_v37, 16  ;;  %v1226_v48 = vand.u32 65535, %v1225_v37 }
0x10dc   :  { %v1229_v43 = vcvt.s32.f32 %v1227_v42  ;;  %v1228_v52 = vcvt.s32.f32 %v1226_v48 }
0x10de   :  { %1230 = vmin.xlane.f32.xlu0 %v1229_v43 }
0x111c   :  { %v1400_v63 = vpop.f32.mrb[12].mxu0 }
0x111d   :  { %v2308_v4 = vpop.f32.mrb[13].mxu0  ;;  %v1401_v40 = vadd.f32 %v3301_v22, %v1400_v63 }
0x111f   :  { %v2079_v47 = vpop.f32.mrb[12].mxu1 }
0x116b   :  { %v1231_v49 = vpop.xlane.xlu0 %1230 }
0x116c   :  { %vm1232_vm11 = vcmp.eq.f32.partialorder %v1229_v43, %v1231_v49  ;;  %v1237_v19 = vcvt.f32.s32 %v1231_v49 }
0x116d   :  { %v1233_v59 = vsel %vm1232_vm11, %v1228_v52, inf  ;;  %vm867_vm11 = vcmp.eq.f32.partialorder %v88_v38, %v3424_v9 }
0x116e   :  { %1234 = vmin.xlane.f32.xlu1 %v1233_v59  ;;  %v1238_v21 = vshll.u32 %v1237_v19, 16 }
0x11fb   :  { %v1235_v16 = vpop.xlane.xlu1 %1234 }
0x11fc   :  { %v1236_v26 = vcvt.f32.s32 %v1235_v16 }
0x11fe   :  { %v1239_v29 = vadd.s32 %v1238_v21, %v1236_v26 }
0x1200   :  { %v1240_v35 = vcvt.s32.f32 %v1239_v29  ;;  %vm1241_vm13 = vcmp.eq.s32.totalorder %v3129_v1, %v1239_v29 }
0x1201   :  { %v1698_v45 = vsel %vm1241_vm13, 1.0, %v3018_v39 }
0x1202   :  { %v1404_v50 = vmax.f32 %v3533_v56, %v1698_v45  ;;  %v1245_v25 = vsel %vm1244_vm12, %v1240_v35, %v3530_v55  ;;  %v2080_v55 = vpop.f32.mrb[13].mxu1  ;;  %v278_v35 = vmul.f32 1.442695, %v3237_v10  ;;  %vm1255_vm12 = vcmp.eq.f32.partialorder %v88_v38, %v3536_v3 }
0x1203   :  { %v2081_v56 = vadd.f32 %v2080_v55, %v2079_v47  ;;  %v674_v47 = vsel %vm673_vm7, %v3389_v2, 0.0  ;;  %v1062_v55 = vsel %vm1061_vm8, %v3501_v20, 0.0 }
0x1204   :  { %vm1405_vm14 = vcmp.gt.f32.partialorder %v1404_v50, 0.0 }
0x1205   :  { %v1406_v6 = vsel %vm1405_vm14, -inf, %v1401_v40  ;;  %v1524_v58 = vadd.f32 %v2863_v57, %v2081_v56  ;;  %v1054_v40 = vmul.f32 1.442695, %v3501_v20  ;;  %v472_v57 = vmul.f32 1.442695, %v3330_v54 }
0x1206   :  { %1407 = vmax.xlane.f32.xlu0 %v1406_v6 }
0x1293   :  { %v1408_v8 = vpop.xlane.xlu0 %1407 }
0x1294   :  { %v1409_v13 = vsub.f32 %v1406_v6, %v1408_v8 }
0x1296   :  { %v1410_v51 = vmul.f32 1.442695, %v1409_v13 }
0x1298   :  { %2819 = vpow2.f32 %v1410_v51 }
0x12a2   :  { %v2820_v53 = vpop.eup %2819 }
0x12a3   :  { %1412 = vadd.xlane.f32.xlu1 %v2820_v53 }
0x1330   :  { %v1413_v46 = vpop.xlane.xlu1 %1412 }
0x1331   :  { %2821 = vrcp.f32 %v1413_v46  ;;  %v2864_v46 = vld [vmem:[#allocation5] sm:$0xff] }
0x1332   :  { %2823 = vtanh.f32 %v1524_v58  ;;  %vm285_vm6 = vcmp.eq.f32.partialorder %v88_v38, %v2864_v46 }
0x133b   :  { %v2822_v62 = vpop.eup %2821 }
0x133c   :  { %v3594_v27 = vmul.f32 %v2822_v62, %v2820_v53  ;;  %v2824_v61 = vpop.eup %2823  ;;  %v286_v62 = vsel %vm285_vm6, %v3237_v10, 0.0  ;;  %v860_v10 = vmul.f32 1.442695, %v3445_v15 }
0x133d   :  { %2342 = vmatmul.mubr.f32.vlgmr.msra.gmra.mrb[14].mxu0 %v2824_v61 }
0x133e   :  { %1416 = vmax.xlane.f32.xlu0 %v3594_v27  ;;  %v1450_v56 = vsel %vm1449_vm9, %v3594_v27, 0.0 }
0x13cb   :  { %v1417_v7 = vpop.xlane.xlu0 %1416 }
0x13cc   :  { %vm1418_vm15 = vcmp.eq.f32.partialorder %v3594_v27, %v1417_v7 }
0x13cd   :  { %v1419_v28 = vsel %vm1418_vm15, %v3129_v1, 128 }
0x13ce   :  { %v1421_v5 = vshra.s32 %v1419_v28, 16  ;;  %v1420_v11 = vand.u32 65535, %v1419_v28 }
0x13d0   :  { %v1423_v14 = vcvt.s32.f32 %v1421_v5  ;;  %v1422_v18 = vcvt.s32.f32 %v1420_v11 }
0x13d2   :  { %1424 = vmin.xlane.f32.xlu1 %v1423_v14 }
0x1410   :  { %v1594_v24 = vpop.f32.mrb[14].mxu0 }
0x1411   :  { %v2343_v30 = vpop.f32.mrb[15].mxu0  ;;  %v1595_v49 = vadd.f32 %v3301_v22, %v1594_v24  ;;  %v666_v22 = vmul.f32 1.442695, %v3389_v2  ;;  %v868_v24 = vsel %vm867_vm11, %v3445_v15, 0.0 }
0x1412   :  { %v1632_v30 = vld [vmem:[#allocation5 + $0x38] sm:$0xff] }
0x1413   :  { %vm1640_vm13 = vcmp.eq.f32.partialorder %v88_v38, %v1632_v30 }
0x145f   :  { %v1425_v12 = vpop.xlane.xlu1 %1424 }
0x1460   :  { %vm1426_vm0 = vcmp.eq.f32.partialorder %v1423_v14, %v1425_v12  ;;  %v1431_v31 = vcvt.f32.s32 %v1425_v12 }
0x1461   :  { %v1427_v23 = vsel %vm1426_vm0, %v1422_v18, inf  ;;  %v2865_v18 = vld [vmem:[#allocation5 + $0x8] sm:$0xff]  ;;  %vm1654_vm0 = vcmask 0  }
0x1462   :  { %1428 = vmin.xlane.f32.xlu0 %v1427_v23  ;;  %v1432_v37 = vshll.u32 %v1431_v31, 16  ;;  %vm479_vm1 = vcmp.eq.f32.partialorder %v88_v38, %v2865_v18  ;;  %v1256_v31 = vsel %vm1255_vm12, %v3556_v17, 0.0 }
0x1463   :  { %v480_v23 = vsel %vm479_vm1, %v3330_v54, 0.0 }
0x14ef   :  { %v1429_v36 = vpop.xlane.xlu0 %1428 }
0x14f0   :  { %v1430_v42 = vcvt.f32.s32 %v1429_v36 }
0x14f2   :  { %v1433_v43 = vadd.s32 %v1432_v37, %v1430_v42 }
0x14f4   :  { %v1434_v48 = vcvt.s32.f32 %v1433_v43  ;;  %vm1435_vm3 = vcmp.eq.s32.totalorder %v3129_v1, %v1433_v43 }
0x14f5   :  { %v1699_v52 = vsel %vm1435_vm3, 1.0, %v3018_v39 }
0x14f6   :  { %v1598_v59 = vmax.f32 %v1404_v50, %v1699_v52  ;;  %v3606_v63 = vsel %vm1438_vm2, %v1434_v48, %v1245_v25  ;;  %v1442_v25 = vmul.f32 1.442695, %v3594_v27 }
0x14f8   :  { %vm1599_vm4 = vcmp.gt.f32.partialorder %v1598_v59, 0.0 }
0x14f9   :  { %v1600_v4 = vsel %vm1599_vm4, -inf, %v1595_v49 }
0x14fa   :  { %1601 = vmax.xlane.f32.xlu1 %v1600_v4 }
0x1587   :  { %v1602_v19 = vpop.xlane.xlu1 %1601 }
0x1588   :  { %v1603_v16 = vsub.f32 %v1600_v4, %v1602_v19 }
0x158a   :  { %v1604_v21 = vmul.f32 1.442695, %v1603_v16 }
0x158c   :  { %2825 = vpow2.f32 %v1604_v21 }
0x1596   :  { %v2826_v26 = vpop.eup %2825 }
0x1597   :  { %1606 = vadd.xlane.f32.xlu0 %v2826_v26 }
0x1624   :  { %v1607_v29 = vpop.xlane.xlu0 %1606 }
0x1625   :  { %2827 = vrcp.f32 %v1607_v29 }
0x1626   :  { %2829 = vpow2.f32 %v278_v35 }
0x1627   :  { %2831 = vpow2.f32 %v666_v22 }
0x1628   :  { %2833 = vpow2.f32 %v1054_v40 }
0x1629   :  { %2835 = vpow2.f32 %v1442_v25 }
0x162a   :  { %2837 = vpow2.f32 %v472_v57  ;;  %v90_v57 = vshrl.u32 %v86_v0, 7 }
0x162b   :  { %2839 = vpow2.f32 %v860_v10 }
0x162c   :  { %2841 = vpow2.f32 %v1248_v60  ;;  %vm92_vm15 = vcmp.lt.s32.totalorder %v90_v57, 4 }
0x162f   :  { %v2828_v45 = vpop.eup %2827 }
0x1630   :  { %v3611_v50 = vmul.f32 %v2828_v45, %v2826_v26  ;;  %v2830_v6 = vpop.eup %2829 }
0x1631   :  { %v280_v8 = vsel %vm91_vm5, %v2830_v6, 0.0  ;;  %v2832_v13 = vpop.eup %2831 }
0x1632   :  { %1610 = vmax.xlane.f32.xlu1 %v3611_v50  ;;  %v668_v51 = vsel %vm91_vm5, %v2832_v13, 0.0  ;;  %v2834_v53 = vpop.eup %2833  ;;  %v1633_v32 = vmul.f32 1.442695, %v3611_v50  ;;  %v1641_v36 = vsel %vm1640_vm13, %v3611_v50, 0.0 }
0x1633   :  { %v1056_v33 = vsel %vm91_vm5, %v2834_v53, 0.0  ;;  %v2836_v34 = vpop.eup %2835 }
0x1634   :  { %v1444_v41 = vsel %vm91_vm5, %v2836_v34, 0.0  ;;  %v2838_v27 = vpop.eup %2837  ;;  %2843 = vpow2.f32 %v1633_v32 }
0x1635   :  { %v474_v61 = vsel %vm91_vm5, %v2838_v27, 0.0  ;;  %v2840_v7 = vpop.eup %2839 }
0x1636   :  { %281 = vadd.xlane.f32.xlu1 %v280_v8  ;;  %v862_v28 = vsel %vm91_vm5, %v2840_v7, 0.0  ;;  %v2842_v5 = vpop.eup %2841 }
0x1637   :  { %v1250_v14 = vsel %vm91_vm5, %v2842_v5, 0.0 }
0x163a   :  { %669 = vadd.xlane.f32.xlu1 %v668_v51 }
0x163e   :  { %1057 = vadd.xlane.f32.xlu1 %v1056_v33  ;;  %v2844_v11 = vpop.eup %2843 }
0x163f   :  { %v1635_v12 = vsel %vm91_vm5, %v2844_v11, 0.0 }
0x1642   :  { %1445 = vadd.xlane.f32.xlu1 %v1444_v41 }
0x1646   :  { %287 = vadd.xlane.f32.xlu1 %v286_v62 }
0x164a   :  { %675 = vadd.xlane.f32.xlu1 %v674_v47 }
0x164e   :  { %1063 = vadd.xlane.f32.xlu1 %v1062_v55 }
0x1652   :  { %1451 = vadd.xlane.f32.xlu1 %v1450_v56 }
0x16bf   :  { %v1611_v58 = vpop.xlane.xlu1 %1610 }
0x16c0   :  { %vm1612_vm10 = vcmp.eq.f32.partialorder %v3611_v50, %v1611_v58 }
0x16c1   :  { %v1613_v2 = vsel %vm1612_vm10, %v3129_v1, 128 }
0x16c2   :  { %v1615_v44 = vshra.s32 %v1613_v2, 16  ;;  %v1614_v43 = vand.u32 65535, %v1613_v2 }
0x16c3   :  { %v282_v37 = vpop.xlane.xlu1 %281 }
0x16c4   :  { %v1617_v20 = vcvt.s32.f32 %v1615_v44  ;;  %v1616_v9 = vcvt.s32.f32 %v1614_v43  ;;  %2845 = vlog2.f32 %v282_v37 }
0x16c6   :  { %1618 = vmin.xlane.f32.xlu0 %v1617_v20 }
0x16c7   :  { %v670_v42 = vpop.xlane.xlu1 %669 }
0x16ca   :  { %475 = vadd.xlane.f32.xlu0 %v474_v61 }
0x16cb   :  { %v1058_v54 = vpop.xlane.xlu1 %1057 }
0x16ce   :  { %863 = vadd.xlane.f32.xlu0 %v862_v28  ;;  %v2846_v4 = vpop.eup %2845 }
0x16cf   :  { %v1446_v3 = vpop.xlane.xlu1 %1445  ;;  %v284_v29 = vmul.f32 0.6931472, %v2846_v4 }
0x16d2   :  { %1251 = vadd.xlane.f32.xlu0 %v1250_v14  ;;  %v1688_v14 = vsel %vm92_vm15, 1.0, %v3018_v39 }
0x16d3   :  { %v288_v52 = vpop.xlane.xlu1 %287 }
0x16d4   :  { %v289_v45 = vsub.f32 %v284_v29, %v288_v52 }
0x16d6   :  { %1636 = vadd.xlane.f32.xlu0 %v1635_v12 }
0x16d7   :  { %v676_v16 = vpop.xlane.xlu1 %675 }
0x16da   :  { %481 = vadd.xlane.f32.xlu0 %v480_v23 }
0x16db   :  { %v1064_v8 = vpop.xlane.xlu1 %1063 }
0x16de   :  { %869 = vadd.xlane.f32.xlu0 %v868_v24 }
0x16df   :  { %v1452_v58 = vpop.xlane.xlu1 %1451 }
0x16e2   :  { %1257 = vadd.xlane.f32.xlu0 %v1256_v31 }
0x16e6   :  { %1642 = vadd.xlane.f32.xlu0 %v1641_v36 }
0x1753   :  { %v3652_v48 = vpop.xlane.xlu0 %1618 }
0x1754   :  { %vm1620_vm14 = vcmp.eq.f32.partialorder %v1617_v20, %v3652_v48 }
0x1755   :  { %v1621_v15 = vsel %vm1620_vm14, %v1616_v9, inf }
0x1756   :  { %1622 = vmin.xlane.f32.xlu1 %v1621_v15 }
0x1757   :  { %v476_v49 = vpop.xlane.xlu0 %475 }
0x1758   :  { %2847 = vlog2.f32 %v476_v49 }
0x1759   :  { %2849 = vlog2.f32 %v670_v42 }
0x175b   :  { %v864_v17 = vpop.xlane.xlu0 %863 }
0x175c   :  { %2851 = vlog2.f32 %v864_v17 }
0x175d   :  { %2853 = vlog2.f32 %v1058_v54 }
0x175f   :  { %v1252_v59 = vpop.xlane.xlu0 %1251 }
0x1760   :  { %2855 = vlog2.f32 %v1252_v59 }
0x1761   :  { %2857 = vlog2.f32 %v1446_v3 }
0x1762   :  { %v2848_v19 = vpop.eup %2847 }
0x1763   :  { %v1637_v21 = vpop.xlane.xlu0 %1636  ;;  %v2850_v26 = vpop.eup %2849  ;;  %v478_v35 = vmul.f32 0.6931472, %v2848_v19 }
0x1764   :  { %2859 = vlog2.f32 %v1637_v21  ;;  %v672_v50 = vmul.f32 0.6931472, %v2850_v26 }
0x1766   :  { %v2852_v22 = vpop.eup %2851  ;;  %v677_v13 = vsub.f32 %v672_v50, %v676_v16 }
0x1767   :  { %v482_v40 = vpop.xlane.xlu0 %481  ;;  %v2854_v6 = vpop.eup %2853  ;;  %v866_v53 = vmul.f32 0.6931472, %v2852_v22 }
0x1768   :  { %v483_v25 = vsub.f32 %v478_v35, %v482_v40  ;;  %v1060_v38 = vmul.f32 0.6931472, %v2854_v6 }
0x176a   :  { %v484_v51 = vadd.f32 %v483_v25, %v289_v45  ;;  %v2856_v33 = vpop.eup %2855  ;;  %v1065_v47 = vsub.f32 %v1060_v38, %v1064_v8 }
0x176b   :  { %v870_v34 = vpop.xlane.xlu0 %869  ;;  %v2858_v62 = vpop.eup %2857  ;;  %v1254_v56 = vmul.f32 0.6931472, %v2856_v33 }
0x176c   :  { %v678_v41 = vadd.f32 %v677_v13, %v484_v51  ;;  %v871_v46 = vsub.f32 %v866_v53, %v870_v34  ;;  %v1448_v2 = vmul.f32 0.6931472, %v2858_v62 }
0x176e   :  { %v872_v55 = vadd.f32 %v871_v46, %v678_v41  ;;  %v2860_v10 = vpop.eup %2859  ;;  %v1453_v32 = vsub.f32 %v1448_v2, %v1452_v58 }
0x176f   :  { %v1258_v60 = vpop.xlane.xlu0 %1257  ;;  %v1639_v61 = vmul.f32 0.6931472, %v2860_v10 }
0x1770   :  { %v1066_v44 = vadd.f32 %v1065_v47, %v872_v55  ;;  %v1259_v20 = vsub.f32 %v1254_v56, %v1258_v60 }
0x1772   :  { %v1260_v27 = vadd.f32 %v1259_v20, %v1066_v44 }
0x1773   :  { %v1643_v7 = vpop.xlane.xlu0 %1642 }
0x1774   :  { %v1454_v28 = vadd.f32 %v1453_v32, %v1260_v27  ;;  %v1644_v5 = vsub.f32 %v1639_v61, %v1643_v7 }
0x1776   :  { %v1645_v11 = vadd.f32 %v1644_v5, %v1454_v28 }
0x1778   :  { %v1646_v12 = vmul.f32 %v1688_v14, %v1645_v11 }
0x177a   :  { %v1647_v18 = vrot.slane %v1646_v12, 4 }
0x177c   :  { %v1648_v23 = vadd.f32 %v1647_v18, %v1646_v12 }
0x177e   :  { %v1649_v0 = vrot.slane %v1648_v23, 2 }
0x1780   :  { %v1650_v24 = vadd.f32 %v1649_v0, %v1648_v23 }
0x1782   :  { %v1651_v30 = vrot.slane %v1650_v24, 1 }
0x1784   :  { %v1652_v31 = vadd.f32 %v1651_v30, %v1650_v24 }
0x1786   :  { %v1653_v36 = vmul.f32 0.25, %v1652_v31 }
0x1788   :  { %1655 = vst.msk [vmem:[#allocation10] sm:$0x1] %vm1654_vm0, %v1653_v36 }
0x1789   :  { %2965 = shalt.err (!%p2962_p8)
}
0x178a   :  { %s2966_s30 = scalar_lea.hbm %s3692_s8, 16 }
0x178b   :  { %p2967_p9 = scmp.ne.s32.totalorder %s3692_s8, %s2966_s30  ;;  %p2970_p10 = scmp.lt.u32.totalorder %s2966_s30, %s3692_s8 }
0x178d   :  { %p2972_p11 = pnand %p2970_p10, %p2967_p9 }
0x178f   :  { %2975 = shalt.err (!%p2972_p11)
}
0x1790   :  { %1666 = dma.vmem_to_hbm [thread:$0]  %s1664_s7, 16, %s3692_s8, [#allocation4]   ;;  %v1625_v39 = vcvt.f32.s32 %v3652_v48  ;;  %vm1629_vm2 = vcmp.eq.s32.totalorder %v3129_v1, 7 }
0x1791   :  { %s3020_s2 = smov [#allocation11]  }
0x1792   :  { %v1626_v42 = vshll.u32 %v1625_v39, 16  ;;  %s1673_s26 = sshll.u32 %s3020_s2, 4  ;;  %s1674_s26 = int_to_ptr.vmem [resolvable:$true] %s1673_s26 }
0x1793   :  { %s2976_s4 = scalar_lea.vmem %s1674_s26, 128  ;;  %p2981_p13 = scmp.lt.s32.totalorder %s1674_s26, %s1674_s26 }
0x1794   :  { %p2977_p12 = scmp.ne.s32.totalorder %s1674_s26, %s2976_s4  ;;  %p2982_p0 = scmp.lt.s32.totalorder %s2976_s4, %s2976_s4 }
0x1796   :  { %p2983_p1 = por %p2982_p0, %p2981_p13 }
0x1798   :  { %p2984_p2 = pnand %p2983_p1, %p2977_p12 }
0x17e3   :  { %v1623_v37 = vpop.xlane.xlu1 %1622 }
0x17e4   :  { %v1624_v43 = vcvt.f32.s32 %v1623_v37 }
0x17e6   :  { %v1627_v54 = vadd.s32 %v1626_v42, %v1624_v43 }
0x17e8   :  { %v1628_v9 = vcvt.s32.f32 %v1627_v54 }
0x17ea   :  { %v1630_v15 = vsel %vm1629_vm2, %v1628_v9, %v3606_v63 }
0x17eb   :  { %1656 = vst [vmem:[#allocation11] sm:$0xff] %v1630_v15 }
0x17ec   :  { %2987 = shalt.err (!%p2984_p2)
}
0x17ed   :  { %s2988_s20 = scalar_lea.hbm %s3693_s9, 128 }
0x17ee   :  { %p2989_p3 = scmp.ne.s32.totalorder %s3693_s9, %s2988_s20  ;;  %p2992_p4 = scmp.lt.u32.totalorder %s2988_s20, %s3693_s9 }
0x17f0   :  { %p2994_p5 = pnand %p2992_p4, %p2989_p3 }
0x17f2   :  { %2997 = shalt.err (!%p2994_p5)
}
0x17f3   :  { %1676 = dma.vmem_to_hbm [thread:$0]  %s1674_s26, 128, %s3693_s9, [#allocation12]  }
0x17f4   :  { %3004 = dma.done.wait [#allocation4], 16  }
0x17f5   :  { %3005 = vsyncadd [#allocation4], 4294967280 }
0x17f6   :  { %3006 = dma.done.wait [#allocation12], 128  }
0x17f7   :  { %3007 = vsyncadd [#allocation12], 4294967168 }
0x17f8   :  { %1683 = vsyncpa [#allocation3], 1 }
0x17f9   :  { %1684 = vsyncpa [#allocation6], 1 }
0x17fa   :  { %1685 = vsyncpa [#allocation9], 1 }
0x17fb   :  { %1686 = vsyncpa [#allocation4], 1 }
0x17fc   :  { %1687 = vsyncpa [#allocation12], 1 }

</bundles_post_ra>
